<compile_context>
chip_gen: v7x
topology: tpu7x:2x2x1
jax: 0.10.0
libtpu: 0.0.40
codegen_flags: <defaults>
</compile_context>

<pallas_src>
import functools

import jax
import jax.numpy as jnp
from jax.experimental import pallas as pl
from jax.experimental.pallas import tpu as pltpu


def _round_up(x, m):
    return ((x + m - 1) // m) * m


def _vmem_capacity_bytes():
    """Physical VMEM per TensorCore (bytes); conservative 64 MiB fallback (v7x)."""
    try:
        info = pltpu.get_tpu_info()
        for name in ("vmem_capacity_bytes", "vmem_size_bytes", "vmem_bytes"):
            val = getattr(info, name, None)
            if val:
                return int(val)
    except Exception:
        pass
    return 64 << 20


def _vq_kernel(x_ref, e_ref, e2_ref, dist_ref, enc_ref, q_ref, hist_ref, sse_ref,
               *, t_valid):
    """One (D, tile_T) NCW slab of one batch element.

    Computes distances to all codes, the nearest-code one-hot, quantized rows
    (written back in NCW layout), and per-batch histogram / squared-error
    accumulators that stay output-resident across the inner "arbitrary" axis.
    """
    j = pl.program_id(1)                      # T-block index ("arbitrary" axis)

    @pl.when(j == 0)
    def _():
        hist_ref[...] = jnp.zeros_like(hist_ref)
        sse_ref[...] = jnp.zeros_like(sse_ref)

    x_dt = x_ref[...]                         # (D, tile_T) straight from NCW input
    x = x_dt.T                                # (tile_T, D); XLU transpose (slack unit)
    e = e_ref[...]                            # (K_pad, D); rows >= K are zero
    e2 = e2_ref[...]                          # (1, K_pad); entries >= K are ~1e30

    # distances = |x|^2 + |e|^2 - 2 x e^T  -> (tile_T, K_pad), lane-dense (K_pad % 128 == 0)
    xe = jnp.dot(x, e.T, preferred_element_type=jnp.float32)      # MXU matmul
    x2 = jnp.sum(x * x, axis=1, keepdims=True)                    # (tile_T, 1)
    dist = x2 + e2 - 2.0 * xe
    dist_ref[...] = dist

    # argmin over codes (first minimal index, matching torch.argmin on finite input)
    # TODO(synk): an all-NaN distance row yields an all-zero one-hot, unlike torch.argmin.
    k_pad = e.shape[0]
    iota_k = jax.lax.broadcasted_iota(jnp.int32, dist.shape, 1)
    min_val = jnp.min(dist, axis=1, keepdims=True)
    idx = jnp.min(jnp.where(dist == min_val, iota_k, k_pad), axis=1, keepdims=True)
    onehot = (iota_k == idx).astype(jnp.float32)
    enc_ref[...] = onehot.astype(enc_ref.dtype)   # bf16 write is lossless for 0/1

    # quantized = one_hot @ embedding, written back as a (D, tile_T) NCW slab
    q = jnp.dot(onehot, e, preferred_element_type=jnp.float32)    # (tile_T, D)
    q_ref[...] = q.T.astype(q_ref.dtype)

    # mask the ragged tail of the last T block (its reads are garbage, its writes
    # are masked by Pallas) so the accumulators stay exact.
    tile_t = x.shape[0]
    t_ids = j * tile_t + jax.lax.broadcasted_iota(jnp.int32, (tile_t, 1), 0)
    valid = t_ids < t_valid                                        # (tile_T, 1) bool

    # per-batch code histogram (perplexity) and sum((q - x)^2) (commitment loss);
    # jnp.where (not a multiply) so NaN garbage in the ragged tail cannot leak in.
    hist_ref[...] += jnp.sum(jnp.where(valid, onehot, 0.0), axis=0, keepdims=True)
    sse_ref[...] += jnp.sum(jnp.where(valid, (q - x) ** 2, 0.0), axis=0, keepdims=True)


def vq_ema_forward(inputs, embedding, commitment_cost, *, tile_t=None,
                   encodings_dtype=jnp.bfloat16):
    """Eval-mode forward of VectorQuantizerEMA.

    inputs:    (B, D, T) float32   (PyTorch NCW conv layout)
    embedding: (K, D)    float32   codebook (self._embedding.weight)
    returns (loss, quantized (B, D, T), perplexity, encodings (N, K), distances (N, K))

    encodings are returned as bfloat16 by default (exact for one-hot 0/1 values);
    pass encodings_dtype=jnp.float32 for dtype parity with the PyTorch module.
    """
    B, D, T = inputs.shape
    K = embedding.shape[0]
    N = B * T
    K_pad = _round_up(K, 128)                 # lane-dense code axis

    # Codebook (padded) and hoisted |e|^2 (computed once, not per grid step);
    # padded codes get a huge norm so the argmin can never select them.
    e_pad = embedding if K_pad == K else jnp.pad(embedding, ((0, K_pad - K), (0, 0)))
    e2 = jnp.sum(embedding.astype(jnp.float32) ** 2, axis=1)
    if K_pad != K:
        e2 = jnp.concatenate([e2, jnp.full((K_pad - K,), 1e30, jnp.float32)])
    e2_pad = e2[None, :]                      # (1, K_pad)

    # --- per-chip VMEM budget -> tile_T --------------------------------------
    vmem_cap = max(_vmem_capacity_bytes(), 32 << 20)
    budget = min(int(0.75 * vmem_cap), 100 << 20)   # ~48 MiB on v7x, ~96 MiB on v5e/v6e
    enc_bytes = jnp.dtype(encodings_dtype).itemsize
    per_t = 2 * (8 * D + (4 + enc_bytes) * K_pad)   # double-buffered x+q+dist+enc per time step
    fixed = 2 * (K_pad * D + K_pad) * 4 + 16 * (K_pad + D) + (2 << 20)  # codebook + accum + slack
    avail = budget - fixed
    cap = 128 if avail <= 0 else max(128, (avail // per_t) // 128 * 128)
    if tile_t is not None:                    # manual override (128-aligned, or >= T)
        tile_T = T if int(tile_t) >= T else max(128, (int(tile_t) // 128) * 128)
    else:
        tile_T = T if T <= cap else max(128, min(cap, 1024))
    t_blocks = -(-T // tile_T)
    vmem_limit = int(min(vmem_cap, max(budget, fixed + per_t * tile_T + (4 << 20))))

    kernel = functools.partial(_vq_kernel, t_valid=T)

    out_shapes = (
        jax.ShapeDtypeStruct((B, T, K_pad), jnp.float32),      # distances
        jax.ShapeDtypeStruct((B, T, K_pad), encodings_dtype),  # one-hot encodings
        jax.ShapeDtypeStruct((B, D, T), inputs.dtype),         # quantized, NCW layout
        jax.ShapeDtypeStruct((B, 1, K_pad), jnp.float32),      # per-batch code histogram
        jax.ShapeDtypeStruct((B, 1, D), jnp.float32),          # per-batch sum squared error
    )
    out_specs = (
        pl.BlockSpec((None, tile_T, K_pad), lambda b, j: (b, j, 0)),
        pl.BlockSpec((None, tile_T, K_pad), lambda b, j: (b, j, 0)),
        pl.BlockSpec((None, D, tile_T), lambda b, j: (b, 0, j)),
        pl.BlockSpec((None, 1, K_pad), lambda b, j: (b, 0, 0)),
        pl.BlockSpec((None, 1, D), lambda b, j: (b, 0, 0)),
    )

    def _run(single_buffer_codebook):
        cb_kwargs = {}
        if single_buffer_codebook:
            # constant-index codebook blocks are DMA'd once; one buffer is enough
            cb_kwargs["pipeline_mode"] = pl.Buffered(1)
        in_specs = [
            pl.BlockSpec((None, D, tile_T), lambda b, j: (b, 0, j)),   # NCW activation slab
            pl.BlockSpec((K_pad, D), lambda b, j: (0, 0), **cb_kwargs),
            pl.BlockSpec((1, K_pad), lambda b, j: (0, 0), **cb_kwargs),
        ]
        return pl.pallas_call(
            kernel,
            out_shape=out_shapes,
            grid=(B, t_blocks),
            in_specs=in_specs,
            out_specs=out_specs,
            compiler_params=pltpu.CompilerParams(
                dimension_semantics=("parallel", "arbitrary"),  # batch axis -> megacore on v7x
                vmem_limit_bytes=vmem_limit,
            ),
        )(inputs, e_pad, e2_pad)

    try:
        dist_btk, enc_btk, quantized, hist, sse = _run(True)
    except Exception:
        # pl.Buffered(1) single-buffering unsupported on this jax version;
        # fall back to default double-buffered codebook blocks.
        dist_btk, enc_btk, quantized, hist, sse = _run(False)

    # (B, T, K_pad) -> (N, K_pad) is a free contiguous reshape; the column slice
    # (an extra pass over the two big arrays) only happens when K % 128 != 0.
    distances = dist_btk.reshape(N, K_pad)
    encodings = enc_btk.reshape(N, K_pad)
    if K_pad != K:
        distances = distances[:, :K]
        encodings = encodings[:, :K]

    # commitment loss (F.mse_loss, mean reduction) from the in-kernel SSE accumulators
    e_latent_loss = jnp.sum(sse) / (N * D)
    loss = commitment_cost * e_latent_loss

    # perplexity from the in-kernel code histogram (no re-read of encodings)
    avg_probs = jnp.sum(hist[:, 0, :], axis=0)[:K] / N
    perplexity = jnp.exp(-jnp.sum(avg_probs * jnp.log(avg_probs + 1e-10)))

    # The straight-through expression inputs + sg(quantized - inputs) has a forward
    # value identical to `quantized`, so `quantized` is returned directly
    # (pallas_call has no VJP; this is an eval/forward-only kernel).
    # TODO(synk): training-mode EMA buffer updates (_ema_cluster_size, _ema_w,
    #             embedding re-normalization) and the optional `offstage`
    #             index-masking branch are stateful / not part of the eval
    #             forward and are not implemented here.
    return loss, quantized, perplexity, encodings, distances


def _reference_forward(inputs, embedding, commitment_cost):
    """Pure-JAX reference mirroring the PyTorch module (eval mode)."""
    B, D, T = inputs.shape
    x = jnp.transpose(inputs, (0, 2, 1)).reshape(B * T, D)
    dist = (jnp.sum(x ** 2, axis=1, keepdims=True)
            + jnp.sum(embedding ** 2, axis=1)
            - 2.0 * x @ embedding.T)
    idx = jnp.argmin(dist, axis=1)
    enc = jax.nn.one_hot(idx, embedding.shape[0], dtype=jnp.float32)
    q = (enc @ embedding).reshape(B, T, D)
    inputs_btd = x.reshape(B, T, D)
    loss = commitment_cost * jnp.mean((q - inputs_btd) ** 2)
    avg_probs = jnp.mean(enc, axis=0)
    perp = jnp.exp(-jnp.sum(avg_probs * jnp.log(avg_probs + 1e-10)))
    return loss, jnp.transpose(q, (0, 2, 1)), perp, enc, dist


if __name__ == "__main__":
    # Deterministic "module init": embedding.weight ~ N(0, 1)
    num_embeddings = 64    # K
    embedding_dim = 32     # D
    commitment_cost = 0.25

    key = jax.random.PRNGKey(0)
    k_w, k_x1, k_x2 = jax.random.split(key, 3)
    embedding_w = jax.random.normal(k_w, (num_embeddings, embedding_dim), jnp.float32)

    def check(x, **kw):
        out = jax.block_until_ready(vq_ema_forward(x, embedding_w, commitment_cost, **kw))
        loss, quantized, perplexity, encodings, distances = out
        r_loss, r_q, r_perp, r_enc, r_dist = _reference_forward(
            x, embedding_w, commitment_cost)
        n = x.shape[0] * x.shape[2]
        assert quantized.shape == x.shape
        assert encodings.shape == (n, num_embeddings)
        assert distances.shape == (n, num_embeddings)
        assert jnp.allclose(loss, r_loss, rtol=1e-4, atol=1e-4)
        assert jnp.allclose(quantized, r_q, atol=1e-5)
        assert jnp.allclose(perplexity, r_perp, rtol=1e-4, atol=1e-3)
        assert jnp.allclose(encodings.astype(jnp.float32), r_enc)
        assert jnp.allclose(distances, r_dist, rtol=1e-4, atol=2e-3)

    # Small shape in the module's NCW layout (B, D, T); single T-block per batch.
    check(jax.random.normal(k_x1, (2, embedding_dim, 8), jnp.float32))
    # Multi-T-block grid with a ragged last block (320 = 2*128 + 64) and odd B;
    # exercises the accumulators, ragged-edge masking and the parallel batch axis.
    check(jax.random.normal(k_x2, (3, embedding_dim, 320), jnp.float32), tile_t=128)
    # Also verify the float32-encodings (exact PyTorch dtype parity) path.
    check(jax.random.normal(k_x1, (2, embedding_dim, 8), jnp.float32),
          encodings_dtype=jnp.float32)

    print("KERNEL_OK")
</pallas_src>

<mosaic_0001>
module attributes {stable_mosaic.version = 11 : i64} {
  func.func @_vq_kernel(%arg0: i32, %arg1: i32, %arg2: memref<1x32x8xf32, #tpu.memory_space<vmem>>, %arg3: memref<128x32xf32, #tpu.memory_space<vmem>>, %arg4: memref<1x128xf32, #tpu.memory_space<vmem>>, %arg5: memref<1x8x128xf32, #tpu.memory_space<vmem>>, %arg6: memref<1x8x128xbf16, #tpu.memory_space<vmem>>, %arg7: memref<1x32x8xf32, #tpu.memory_space<vmem>>, %arg8: memref<1x1x128xf32, #tpu.memory_space<vmem>>, %arg9: memref<1x1x32xf32, #tpu.memory_space<vmem>>) attributes {dimension_semantics = [#tpu.dimension_semantics<parallel>, #tpu.dimension_semantics<arbitrary>], iteration_bounds = array<i64: 2, 1>, scalar_prefetch = 0 : i64, scratch_operands = 0 : i64, tpu.core_type = #tpu.core_type<tc>, window_params = [{transform_indices = @transform_0, window_bounds = array<i64: 1, 32, 8>}, {pipeline_mode = #tpu.pipeline_mode<synchronous>, transform_indices = @transform_1, window_bounds = array<i64: 128, 32>}, {pipeline_mode = #tpu.pipeline_mode<synchronous>, transform_indices = @transform_2, window_bounds = array<i64: 1, 128>}, {transform_indices = @transform_3, window_bounds = array<i64: 1, 8, 128>}, {transform_indices = @transform_4, window_bounds = array<i64: 1, 8, 128>}, {transform_indices = @transform_5, window_bounds = array<i64: 1, 32, 8>}, {transform_indices = @transform_6, window_bounds = array<i64: 1, 1, 128>}, {transform_indices = @transform_7, window_bounds = array<i64: 1, 1, 32>}]} {
    %c0_i32 = arith.constant 0 : i32
    %0 = arith.cmpi eq, %arg1, %c0_i32 : i32
    %1 = arith.extui %0 : i1 to i32
    %c0_i32_0 = arith.constant 0 : i32
    %2 = arith.cmpi ne, %1, %c0_i32_0 : i32
    scf.if %2 {
      %cst_38 = arith.constant 0.000000e+00 : f32
      %76 = vector.broadcast %cst_38 : f32 to vector<1x128xf32>
      %c0_39 = arith.constant 0 : index
      %c0_40 = arith.constant 0 : index
      %c0_41 = arith.constant 0 : index
      %77 = vector.load %arg8[%c0_39, %c0_40, %c0_41] : memref<1x1x128xf32, #tpu.memory_space<vmem>>, vector<1x1x128xf32>
      %78 = vector.shape_cast %77 : vector<1x1x128xf32> to vector<1x128xf32>
      %79 = vector.shape_cast %76 : vector<1x128xf32> to vector<1x1x128xf32>
      tpu.vector_store %arg8[%c0_39, %c0_40, %c0_41], %79 {strides = array<i32>} : memref<1x1x128xf32, #tpu.memory_space<vmem>>, vector<1x1x128xf32>,
      %cst_42 = arith.constant 0.000000e+00 : f32
      %80 = vector.broadcast %cst_42 : f32 to vector<1x32xf32>
      %c0_43 = arith.constant 0 : index
      %c0_44 = arith.constant 0 : index
      %c0_45 = arith.constant 0 : index
      %81 = vector.load %arg9[%c0_43, %c0_44, %c0_45] : memref<1x1x32xf32, #tpu.memory_space<vmem>>, vector<1x1x32xf32>
      %82 = vector.shape_cast %81 : vector<1x1x32xf32> to vector<1x32xf32>
      %83 = vector.shape_cast %80 : vector<1x32xf32> to vector<1x1x32xf32>
      tpu.vector_store %arg9[%c0_43, %c0_44, %c0_45], %83 {strides = array<i32>} : memref<1x1x32xf32, #tpu.memory_space<vmem>>, vector<1x1x32xf32>,
    } else {
    }
    %c0 = arith.constant 0 : index
    %c0_1 = arith.constant 0 : index
    %c0_2 = arith.constant 0 : index
    %3 = vector.load %arg2[%c0, %c0_1, %c0_2] : memref<1x32x8xf32, #tpu.memory_space<vmem>>, vector<1x32x8xf32>
    %4 = vector.shape_cast %3 : vector<1x32x8xf32> to vector<32x8xf32>
    %5 = tpu.transpose %4, [1, 0] : vector<32x8xf32> -> vector<8x32xf32>
    %c0_3 = arith.constant 0 : index
    %c0_4 = arith.constant 0 : index
    %6 = vector.load %arg3[%c0_3, %c0_4] : memref<128x32xf32, #tpu.memory_space<vmem>>, vector<128x32xf32>
    %c0_5 = arith.constant 0 : index
    %c0_6 = arith.constant 0 : index
    %7 = vector.load %arg4[%c0_5, %c0_6] : memref<1x128xf32, #tpu.memory_space<vmem>>, vector<1x128xf32>
    %8 = tpu.transpose %6, [1, 0] : vector<128x32xf32> -> vector<32x128xf32>
    %cst = arith.constant dense<0.000000e+00> : vector<8x128xf32>
    %9 = tpu.matmul %5, %8, %cst {dimension_numbers = #tpu.dot_dimension_numbers<[1], [0], [0], [1], [0, 0, 1, 1], [], []>} : vector<8x32xf32>, vector<32x128xf32>, vector<8x128xf32> -> vector<8x128xf32>
    %10 = arith.mulf %5, %5 : vector<8x32xf32>
    %cst_7 = arith.constant dense<0.000000e+00> : vector<8xf32>
    %11 = vector.multi_reduction <add>, %10, %cst_7 [1] : vector<8x32xf32> to vector<8xf32>
    %12 = vector.shape_cast %11 : vector<8xf32> to vector<8x1xf32>
    %13 = vector.broadcast %12 : vector<8x1xf32> to vector<8x128xf32>
    %14 = vector.broadcast %7 : vector<1x128xf32> to vector<8x128xf32>
    %15 = arith.addf %13, %14 : vector<8x128xf32>
    %cst_8 = arith.constant 2.000000e+00 : f32
    %16 = vector.broadcast %cst_8 : f32 to vector<8x128xf32>
    %17 = arith.mulf %16, %9 : vector<8x128xf32>
    %18 = arith.subf %15, %17 : vector<8x128xf32>
    %c0_9 = arith.constant 0 : index
    %c0_10 = arith.constant 0 : index
    %c0_11 = arith.constant 0 : index
    %19 = vector.load %arg5[%c0_9, %c0_10, %c0_11] : memref<1x8x128xf32, #tpu.memory_space<vmem>>, vector<1x8x128xf32>
    %20 = vector.shape_cast %19 : vector<1x8x128xf32> to vector<8x128xf32>
    %21 = vector.shape_cast %18 : vector<8x128xf32> to vector<1x8x128xf32>
    tpu.vector_store %arg5[%c0_9, %c0_10, %c0_11], %21 {strides = array<i32>} : memref<1x8x128xf32, #tpu.memory_space<vmem>>, vector<1x8x128xf32>,
    %22 = tpu.iota {dimensions = array<i32: 1>} : vector<8x128xi32>
    %cst_12 = arith.constant dense<0x7F800000> : vector<8xf32>
    %23 = vector.multi_reduction <minimumf>, %18, %cst_12 [1] : vector<8x128xf32> to vector<8xf32>
    %24 = vector.shape_cast %23 : vector<8xf32> to vector<8x1xf32>
    %25 = vector.broadcast %24 : vector<8x1xf32> to vector<8x128xf32>
    %26 = arith.cmpf oeq, %18, %25 : vector<8x128xf32>
    %c128_i32 = arith.constant 128 : i32
    %27 = vector.broadcast %c128_i32 : i32 to vector<8x128xi32>
    %28 = arith.select %26, %22, %27 : vector<8x128xi1>, vector<8x128xi32>
    %cst_13 = arith.constant dense<2147483647> : vector<8xi32>
    %29 = vector.multi_reduction <minsi>, %28, %cst_13 [1] : vector<8x128xi32> to vector<8xi32>
    %30 = vector.shape_cast %29 : vector<8xi32> to vector<8x1xi32>
    %31 = vector.broadcast %30 : vector<8x1xi32> to vector<8x128xi32>
    %32 = arith.cmpi eq, %22, %31 : vector<8x128xi32>
    %33 = arith.extui %32 : vector<8x128xi1> to vector<8x128xi32>
    %34 = arith.sitofp %33 : vector<8x128xi32> to vector<8x128xf32>
    %35 = arith.truncf %34 : vector<8x128xf32> to vector<8x128xbf16>
    %c0_14 = arith.constant 0 : index
    %c0_15 = arith.constant 0 : index
    %c0_16 = arith.constant 0 : index
    %36 = vector.load %arg6[%c0_14, %c0_15, %c0_16] : memref<1x8x128xbf16, #tpu.memory_space<vmem>>, vector<1x8x128xbf16>
    %37 = vector.shape_cast %36 : vector<1x8x128xbf16> to vector<8x128xbf16>
    %38 = vector.shape_cast %35 : vector<8x128xbf16> to vector<1x8x128xbf16>
    tpu.vector_store %arg6[%c0_14, %c0_15, %c0_16], %38 {strides = array<i32>} : memref<1x8x128xbf16, #tpu.memory_space<vmem>>, vector<1x8x128xbf16>,
    %cst_17 = arith.constant dense<0.000000e+00> : vector<8x32xf32>
    %39 = tpu.matmul %34, %6, %cst_17 {dimension_numbers = #tpu.dot_dimension_numbers<[1], [0], [0], [1], [0, 0, 1, 1], [], []>} : vector<8x128xf32>, vector<128x32xf32>, vector<8x32xf32> -> vector<8x32xf32>
    %40 = tpu.transpose %39, [1, 0] : vector<8x32xf32> -> vector<32x8xf32>
    %c0_18 = arith.constant 0 : index
    %c0_19 = arith.constant 0 : index
    %c0_20 = arith.constant 0 : index
    %41 = vector.load %arg7[%c0_18, %c0_19, %c0_20] : memref<1x32x8xf32, #tpu.memory_space<vmem>>, vector<1x32x8xf32>
    %42 = vector.shape_cast %41 : vector<1x32x8xf32> to vector<32x8xf32>
    %43 = vector.shape_cast %40 : vector<32x8xf32> to vector<1x32x8xf32>
    tpu.vector_store %arg7[%c0_18, %c0_19, %c0_20], %43 {strides = array<i32>} : memref<1x32x8xf32, #tpu.memory_space<vmem>>, vector<1x32x8xf32>,
    %c8_i32 = arith.constant 8 : i32
    %44 = arith.muli %arg1, %c8_i32 : i32
    %45 = tpu.iota {dimensions = array<i32: 0>} : vector<8x1xi32>
    %46 = vector.broadcast %44 : i32 to vector<8x1xi32>
    %47 = arith.addi %46, %45 : vector<8x1xi32>
    %c8_i32_21 = arith.constant 8 : i32
    %48 = vector.broadcast %c8_i32_21 : i32 to vector<8x1xi32>
    %49 = arith.cmpi slt, %47, %48 : vector<8x1xi32>
    %c0_22 = arith.constant 0 : index
    %c0_23 = arith.constant 0 : index
    %c0_24 = arith.constant 0 : index
    %50 = vector.load %arg8[%c0_22, %c0_23, %c0_24] : memref<1x1x128xf32, #tpu.memory_space<vmem>>, vector<1x1x128xf32>
    %51 = vector.shape_cast %50 : vector<1x1x128xf32> to vector<1x128xf32>
    %cst_25 = arith.constant 0.000000e+00 : f32
    %52 = vector.shape_cast %49 : vector<8x1xi1> to vector<8x1xi1>
    %53 = vector.broadcast %52 : vector<8x1xi1> to vector<8x128xi1>
    %54 = vector.broadcast %cst_25 : f32 to vector<8x128xf32>
    %55 = arith.select %53, %34, %54 : vector<8x128xi1>, vector<8x128xf32>
    %cst_26 = arith.constant dense<0.000000e+00> : vector<128xf32>
    %56 = vector.multi_reduction <add>, %55, %cst_26 [0] : vector<8x128xf32> to vector<128xf32>
    %57 = vector.shape_cast %56 : vector<128xf32> to vector<1x128xf32>
    %58 = arith.addf %51, %57 : vector<1x128xf32>
    %c0_27 = arith.constant 0 : index
    %c0_28 = arith.constant 0 : index
    %c0_29 = arith.constant 0 : index
    %59 = vector.load %arg8[%c0_27, %c0_28, %c0_29] : memref<1x1x128xf32, #tpu.memory_space<vmem>>, vector<1x1x128xf32>
    %60 = vector.shape_cast %59 : vector<1x1x128xf32> to vector<1x128xf32>
    %61 = vector.shape_cast %58 : vector<1x128xf32> to vector<1x1x128xf32>
    tpu.vector_store %arg8[%c0_27, %c0_28, %c0_29], %61 {strides = array<i32>} : memref<1x1x128xf32, #tpu.memory_space<vmem>>, vector<1x1x128xf32>,
    %c0_30 = arith.constant 0 : index
    %c0_31 = arith.constant 0 : index
    %c0_32 = arith.constant 0 : index
    %62 = vector.load %arg9[%c0_30, %c0_31, %c0_32] : memref<1x1x32xf32, #tpu.memory_space<vmem>>, vector<1x1x32xf32>
    %63 = vector.shape_cast %62 : vector<1x1x32xf32> to vector<1x32xf32>
    %64 = arith.subf %39, %5 : vector<8x32xf32>
    %65 = arith.mulf %64, %64 : vector<8x32xf32>
    %cst_33 = arith.constant 0.000000e+00 : f32
    %66 = vector.shape_cast %49 : vector<8x1xi1> to vector<8x1xi1>
    %67 = vector.broadcast %66 : vector<8x1xi1> to vector<8x32xi1>
    %68 = vector.broadcast %cst_33 : f32 to vector<8x32xf32>
    %69 = arith.select %67, %65, %68 : vector<8x32xi1>, vector<8x32xf32>
    %cst_34 = arith.constant dense<0.000000e+00> : vector<32xf32>
    %70 = vector.multi_reduction <add>, %69, %cst_34 [0] : vector<8x32xf32> to vector<32xf32>
    %71 = vector.shape_cast %70 : vector<32xf32> to vector<1x32xf32>
    %72 = arith.addf %63, %71 : vector<1x32xf32>
    %c0_35 = arith.constant 0 : index
    %c0_36 = arith.constant 0 : index
    %c0_37 = arith.constant 0 : index
    %73 = vector.load %arg9[%c0_35, %c0_36, %c0_37] : memref<1x1x32xf32, #tpu.memory_space<vmem>>, vector<1x1x32xf32>
    %74 = vector.shape_cast %73 : vector<1x1x32xf32> to vector<1x32xf32>
    %75 = vector.shape_cast %72 : vector<1x32xf32> to vector<1x1x32xf32>
    tpu.vector_store %arg9[%c0_35, %c0_36, %c0_37], %75 {strides = array<i32>} : memref<1x1x32xf32, #tpu.memory_space<vmem>>, vector<1x1x32xf32>,
    return
  }
  func.func @transform_0(%arg0: i32, %arg1: i32) -> (i32, i32, i32) {
    %c0_i32 = arith.constant 0 : i32
    %c0_i32_0 = arith.constant 0 : i32
    return %arg0, %c0_i32, %arg1 : i32, i32, i32
  }
  func.func @transform_1(%arg0: i32, %arg1: i32) -> (i32, i32) {
    %c0_i32 = arith.constant 0 : i32
    %c0_i32_0 = arith.constant 0 : i32
    %c0_i32_1 = arith.constant 0 : i32
    return %c0_i32, %c0_i32_0 : i32, i32
  }
  func.func @transform_2(%arg0: i32, %arg1: i32) -> (i32, i32) {
    %c0_i32 = arith.constant 0 : i32
    %c0_i32_0 = arith.constant 0 : i32
    %c0_i32_1 = arith.constant 0 : i32
    return %c0_i32, %c0_i32_0 : i32, i32
  }
  func.func @transform_3(%arg0: i32, %arg1: i32) -> (i32, i32, i32) {
    %c0_i32 = arith.constant 0 : i32
    %c0_i32_0 = arith.constant 0 : i32
    return %arg0, %arg1, %c0_i32 : i32, i32, i32
  }
  func.func @transform_4(%arg0: i32, %arg1: i32) -> (i32, i32, i32) {
    %c0_i32 = arith.constant 0 : i32
    %c0_i32_0 = arith.constant 0 : i32
    return %arg0, %arg1, %c0_i32 : i32, i32, i32
  }
  func.func @transform_5(%arg0: i32, %arg1: i32) -> (i32, i32, i32) {
    %c0_i32 = arith.constant 0 : i32
    %c0_i32_0 = arith.constant 0 : i32
    return %arg0, %c0_i32, %arg1 : i32, i32, i32
  }
  func.func @transform_6(%arg0: i32, %arg1: i32) -> (i32, i32, i32) {
    %c0_i32 = arith.constant 0 : i32
    %c0_i32_0 = arith.constant 0 : i32
    %c0_i32_1 = arith.constant 0 : i32
    return %arg0, %c0_i32, %c0_i32_0 : i32, i32, i32
  }
  func.func @transform_7(%arg0: i32, %arg1: i32) -> (i32, i32, i32) {
    %c0_i32 = arith.constant 0 : i32
    %c0_i32_0 = arith.constant 0 : i32
    %c0_i32_1 = arith.constant 0 : i32
    return %arg0, %c0_i32, %c0_i32_0 : i32, i32, i32
  }
}

module attributes {stable_mosaic.version = 11 : i64} {
  func.func @_vq_kernel(%arg0: i32, %arg1: i32, %arg2: memref<1x32x8xf32, #tpu.memory_space<vmem>>, %arg3: memref<128x32xf32, #tpu.memory_space<vmem>>, %arg4: memref<1x128xf32, #tpu.memory_space<vmem>>, %arg5: memref<1x8x128xf32, #tpu.memory_space<vmem>>, %arg6: memref<1x8x128xbf16, #tpu.memory_space<vmem>>, %arg7: memref<1x32x8xf32, #tpu.memory_space<vmem>>, %arg8: memref<1x1x128xf32, #tpu.memory_space<vmem>>, %arg9: memref<1x1x32xf32, #tpu.memory_space<vmem>>) attributes {dimension_semantics = [#tpu.dimension_semantics<parallel>, #tpu.dimension_semantics<arbitrary>], iteration_bounds = array<i64: 2, 1>, scalar_prefetch = 0 : i64, scratch_operands = 0 : i64, tpu.core_type = #tpu.core_type<tc>, window_params = [{transform_indices = @transform_0, window_bounds = array<i64: 1, 32, 8>}, {pipeline_mode = #tpu.pipeline_mode<synchronous>, transform_indices = @transform_1, window_bounds = array<i64: 128, 32>}, {pipeline_mode = #tpu.pipeline_mode<synchronous>, transform_indices = @transform_2, window_bounds = array<i64: 1, 128>}, {transform_indices = @transform_3, window_bounds = array<i64: 1, 8, 128>}, {transform_indices = @transform_4, window_bounds = array<i64: 1, 8, 128>}, {transform_indices = @transform_5, window_bounds = array<i64: 1, 32, 8>}, {transform_indices = @transform_6, window_bounds = array<i64: 1, 1, 128>}, {transform_indices = @transform_7, window_bounds = array<i64: 1, 1, 32>}]} {
    %c0_i32 = arith.constant 0 : i32
    %0 = arith.cmpi eq, %arg1, %c0_i32 : i32
    %1 = arith.extui %0 : i1 to i32
    %c0_i32_0 = arith.constant 0 : i32
    %2 = arith.cmpi ne, %1, %c0_i32_0 : i32
    scf.if %2 {
      %cst_38 = arith.constant 0.000000e+00 : f32
      %76 = vector.broadcast %cst_38 : f32 to vector<1x128xf32>
      %c0_39 = arith.constant 0 : index
      %c0_40 = arith.constant 0 : index
      %c0_41 = arith.constant 0 : index
      %77 = vector.load %arg8[%c0_39, %c0_40, %c0_41] : memref<1x1x128xf32, #tpu.memory_space<vmem>>, vector<1x1x128xf32>
      %78 = vector.shape_cast %77 : vector<1x1x128xf32> to vector<1x128xf32>
      %79 = vector.shape_cast %76 : vector<1x128xf32> to vector<1x1x128xf32>
      tpu.vector_store %arg8[%c0_39, %c0_40, %c0_41], %79 {strides = array<i32>} : memref<1x1x128xf32, #tpu.memory_space<vmem>>, vector<1x1x128xf32>,
      %cst_42 = arith.constant 0.000000e+00 : f32
      %80 = vector.broadcast %cst_42 : f32 to vector<1x32xf32>
      %c0_43 = arith.constant 0 : index
      %c0_44 = arith.constant 0 : index
      %c0_45 = arith.constant 0 : index
      %81 = vector.load %arg9[%c0_43, %c0_44, %c0_45] : memref<1x1x32xf32, #tpu.memory_space<vmem>>, vector<1x1x32xf32>
      %82 = vector.shape_cast %81 : vector<1x1x32xf32> to vector<1x32xf32>
      %83 = vector.shape_cast %80 : vector<1x32xf32> to vector<1x1x32xf32>
      tpu.vector_store %arg9[%c0_43, %c0_44, %c0_45], %83 {strides = array<i32>} : memref<1x1x32xf32, #tpu.memory_space<vmem>>, vector<1x1x32xf32>,
    } else {
    }
    %c0 = arith.constant 0 : index
    %c0_1 = arith.constant 0 : index
    %c0_2 = arith.constant 0 : index
    %3 = vector.load %arg2[%c0, %c0_1, %c0_2] : memref<1x32x8xf32, #tpu.memory_space<vmem>>, vector<1x32x8xf32>
    %4 = vector.shape_cast %3 : vector<1x32x8xf32> to vector<32x8xf32>
    %5 = tpu.transpose %4, [1, 0] : vector<32x8xf32> -> vector<8x32xf32>
    %c0_3 = arith.constant 0 : index
    %c0_4 = arith.constant 0 : index
    %6 = vector.load %arg3[%c0_3, %c0_4] : memref<128x32xf32, #tpu.memory_space<vmem>>, vector<128x32xf32>
    %c0_5 = arith.constant 0 : index
    %c0_6 = arith.constant 0 : index
    %7 = vector.load %arg4[%c0_5, %c0_6] : memref<1x128xf32, #tpu.memory_space<vmem>>, vector<1x128xf32>
    %8 = tpu.transpose %6, [1, 0] : vector<128x32xf32> -> vector<32x128xf32>
    %cst = arith.constant dense<0.000000e+00> : vector<8x128xf32>
    %9 = tpu.matmul %5, %8, %cst {dimension_numbers = #tpu.dot_dimension_numbers<[1], [0], [0], [1], [0, 0, 1, 1], [], []>} : vector<8x32xf32>, vector<32x128xf32>, vector<8x128xf32> -> vector<8x128xf32>
    %10 = arith.mulf %5, %5 : vector<8x32xf32>
    %cst_7 = arith.constant dense<0.000000e+00> : vector<8xf32>
    %11 = vector.multi_reduction <add>, %10, %cst_7 [1] : vector<8x32xf32> to vector<8xf32>
    %12 = vector.shape_cast %11 : vector<8xf32> to vector<8x1xf32>
    %13 = vector.broadcast %12 : vector<8x1xf32> to vector<8x128xf32>
    %14 = vector.broadcast %7 : vector<1x128xf32> to vector<8x128xf32>
    %15 = arith.addf %13, %14 : vector<8x128xf32>
    %cst_8 = arith.constant 2.000000e+00 : f32
    %16 = vector.broadcast %cst_8 : f32 to vector<8x128xf32>
    %17 = arith.mulf %16, %9 : vector<8x128xf32>
    %18 = arith.subf %15, %17 : vector<8x128xf32>
    %c0_9 = arith.constant 0 : index
    %c0_10 = arith.constant 0 : index
    %c0_11 = arith.constant 0 : index
    %19 = vector.load %arg5[%c0_9, %c0_10, %c0_11] : memref<1x8x128xf32, #tpu.memory_space<vmem>>, vector<1x8x128xf32>
    %20 = vector.shape_cast %19 : vector<1x8x128xf32> to vector<8x128xf32>
    %21 = vector.shape_cast %18 : vector<8x128xf32> to vector<1x8x128xf32>
    tpu.vector_store %arg5[%c0_9, %c0_10, %c0_11], %21 {strides = array<i32>} : memref<1x8x128xf32, #tpu.memory_space<vmem>>, vector<1x8x128xf32>,
    %22 = tpu.iota {dimensions = array<i32: 1>} : vector<8x128xi32>
    %cst_12 = arith.constant dense<0x7F800000> : vector<8xf32>
    %23 = vector.multi_reduction <minimumf>, %18, %cst_12 [1] : vector<8x128xf32> to vector<8xf32>
    %24 = vector.shape_cast %23 : vector<8xf32> to vector<8x1xf32>
    %25 = vector.broadcast %24 : vector<8x1xf32> to vector<8x128xf32>
    %26 = arith.cmpf oeq, %18, %25 : vector<8x128xf32>
    %c128_i32 = arith.constant 128 : i32
    %27 = vector.broadcast %c128_i32 : i32 to vector<8x128xi32>
    %28 = arith.select %26, %22, %27 : vector<8x128xi1>, vector<8x128xi32>
    %cst_13 = arith.constant dense<2147483647> : vector<8xi32>
    %29 = vector.multi_reduction <minsi>, %28, %cst_13 [1] : vector<8x128xi32> to vector<8xi32>
    %30 = vector.shape_cast %29 : vector<8xi32> to vector<8x1xi32>
    %31 = vector.broadcast %30 : vector<8x1xi32> to vector<8x128xi32>
    %32 = arith.cmpi eq, %22, %31 : vector<8x128xi32>
    %33 = arith.extui %32 : vector<8x128xi1> to vector<8x128xi32>
    %34 = arith.sitofp %33 : vector<8x128xi32> to vector<8x128xf32>
    %35 = arith.truncf %34 : vector<8x128xf32> to vector<8x128xbf16>
    %c0_14 = arith.constant 0 : index
    %c0_15 = arith.constant 0 : index
    %c0_16 = arith.constant 0 : index
    %36 = vector.load %arg6[%c0_14, %c0_15, %c0_16] : memref<1x8x128xbf16, #tpu.memory_space<vmem>>, vector<1x8x128xbf16>
    %37 = vector.shape_cast %36 : vector<1x8x128xbf16> to vector<8x128xbf16>
    %38 = vector.shape_cast %35 : vector<8x128xbf16> to vector<1x8x128xbf16>
    tpu.vector_store %arg6[%c0_14, %c0_15, %c0_16], %38 {strides = array<i32>} : memref<1x8x128xbf16, #tpu.memory_space<vmem>>, vector<1x8x128xbf16>,
    %cst_17 = arith.constant dense<0.000000e+00> : vector<8x32xf32>
    %39 = tpu.matmul %34, %6, %cst_17 {dimension_numbers = #tpu.dot_dimension_numbers<[1], [0], [0], [1], [0, 0, 1, 1], [], []>} : vector<8x128xf32>, vector<128x32xf32>, vector<8x32xf32> -> vector<8x32xf32>
    %40 = tpu.transpose %39, [1, 0] : vector<8x32xf32> -> vector<32x8xf32>
    %c0_18 = arith.constant 0 : index
    %c0_19 = arith.constant 0 : index
    %c0_20 = arith.constant 0 : index
    %41 = vector.load %arg7[%c0_18, %c0_19, %c0_20] : memref<1x32x8xf32, #tpu.memory_space<vmem>>, vector<1x32x8xf32>
    %42 = vector.shape_cast %41 : vector<1x32x8xf32> to vector<32x8xf32>
    %43 = vector.shape_cast %40 : vector<32x8xf32> to vector<1x32x8xf32>
    tpu.vector_store %arg7[%c0_18, %c0_19, %c0_20], %43 {strides = array<i32>} : memref<1x32x8xf32, #tpu.memory_space<vmem>>, vector<1x32x8xf32>,
    %c8_i32 = arith.constant 8 : i32
    %44 = arith.muli %arg1, %c8_i32 : i32
    %45 = tpu.iota {dimensions = array<i32: 0>} : vector<8x1xi32>
    %46 = vector.broadcast %44 : i32 to vector<8x1xi32>
    %47 = arith.addi %46, %45 : vector<8x1xi32>
    %c8_i32_21 = arith.constant 8 : i32
    %48 = vector.broadcast %c8_i32_21 : i32 to vector<8x1xi32>
    %49 = arith.cmpi slt, %47, %48 : vector<8x1xi32>
    %c0_22 = arith.constant 0 : index
    %c0_23 = arith.constant 0 : index
    %c0_24 = arith.constant 0 : index
    %50 = vector.load %arg8[%c0_22, %c0_23, %c0_24] : memref<1x1x128xf32, #tpu.memory_space<vmem>>, vector<1x1x128xf32>
    %51 = vector.shape_cast %50 : vector<1x1x128xf32> to vector<1x128xf32>
    %cst_25 = arith.constant 0.000000e+00 : f32
    %52 = vector.shape_cast %49 : vector<8x1xi1> to vector<8x1xi1>
    %53 = vector.broadcast %52 : vector<8x1xi1> to vector<8x128xi1>
    %54 = vector.broadcast %cst_25 : f32 to vector<8x128xf32>
    %55 = arith.select %53, %34, %54 : vector<8x128xi1>, vector<8x128xf32>
    %cst_26 = arith.constant dense<0.000000e+00> : vector<128xf32>
    %56 = vector.multi_reduction <add>, %55, %cst_26 [0] : vector<8x128xf32> to vector<128xf32>
    %57 = vector.shape_cast %56 : vector<128xf32> to vector<1x128xf32>
    %58 = arith.addf %51, %57 : vector<1x128xf32>
    %c0_27 = arith.constant 0 : index
    %c0_28 = arith.constant 0 : index
    %c0_29 = arith.constant 0 : index
    %59 = vector.load %arg8[%c0_27, %c0_28, %c0_29] : memref<1x1x128xf32, #tpu.memory_space<vmem>>, vector<1x1x128xf32>
    %60 = vector.shape_cast %59 : vector<1x1x128xf32> to vector<1x128xf32>
    %61 = vector.shape_cast %58 : vector<1x128xf32> to vector<1x1x128xf32>
    tpu.vector_store %arg8[%c0_27, %c0_28, %c0_29], %61 {strides = array<i32>} : memref<1x1x128xf32, #tpu.memory_space<vmem>>, vector<1x1x128xf32>,
    %c0_30 = arith.constant 0 : index
    %c0_31 = arith.constant 0 : index
    %c0_32 = arith.constant 0 : index
    %62 = vector.load %arg9[%c0_30, %c0_31, %c0_32] : memref<1x1x32xf32, #tpu.memory_space<vmem>>, vector<1x1x32xf32>
    %63 = vector.shape_cast %62 : vector<1x1x32xf32> to vector<1x32xf32>
    %64 = arith.subf %39, %5 : vector<8x32xf32>
    %65 = arith.mulf %64, %64 : vector<8x32xf32>
    %cst_33 = arith.constant 0.000000e+00 : f32
    %66 = vector.shape_cast %49 : vector<8x1xi1> to vector<8x1xi1>
    %67 = vector.broadcast %66 : vector<8x1xi1> to vector<8x32xi1>
    %68 = vector.broadcast %cst_33 : f32 to vector<8x32xf32>
    %69 = arith.select %67, %65, %68 : vector<8x32xi1>, vector<8x32xf32>
    %cst_34 = arith.constant dense<0.000000e+00> : vector<32xf32>
    %70 = vector.multi_reduction <add>, %69, %cst_34 [0] : vector<8x32xf32> to vector<32xf32>
    %71 = vector.shape_cast %70 : vector<32xf32> to vector<1x32xf32>
    %72 = arith.addf %63, %71 : vector<1x32xf32>
    %c0_35 = arith.constant 0 : index
    %c0_36 = arith.constant 0 : index
    %c0_37 = arith.constant 0 : index
    %73 = vector.load %arg9[%c0_35, %c0_36, %c0_37] : memref<1x1x32xf32, #tpu.memory_space<vmem>>, vector<1x1x32xf32>
    %74 = vector.shape_cast %73 : vector<1x1x32xf32> to vector<1x32xf32>
    %75 = vector.shape_cast %72 : vector<1x32xf32> to vector<1x1x32xf32>
    tpu.vector_store %arg9[%c0_35, %c0_36, %c0_37], %75 {strides = array<i32>} : memref<1x1x32xf32, #tpu.memory_space<vmem>>, vector<1x1x32xf32>,
    return
  }
  func.func @transform_0(%arg0: i32, %arg1: i32) -> (i32, i32, i32) {
    %c0_i32 = arith.constant 0 : i32
    %c0_i32_0 = arith.constant 0 : i32
    return %arg0, %c0_i32, %arg1 : i32, i32, i32
  }
  func.func @transform_1(%arg0: i32, %arg1: i32) -> (i32, i32) {
    %c0_i32 = arith.constant 0 : i32
    %c0_i32_0 = arith.constant 0 : i32
    %c0_i32_1 = arith.constant 0 : i32
    return %c0_i32, %c0_i32_0 : i32, i32
  }
  func.func @transform_2(%arg0: i32, %arg1: i32) -> (i32, i32) {
    %c0_i32 = arith.constant 0 : i32
    %c0_i32_0 = arith.constant 0 : i32
    %c0_i32_1 = arith.constant 0 : i32
    return %c0_i32, %c0_i32_0 : i32, i32
  }
  func.func @transform_3(%arg0: i32, %arg1: i32) -> (i32, i32, i32) {
    %c0_i32 = arith.constant 0 : i32
    %c0_i32_0 = arith.constant 0 : i32
    return %arg0, %arg1, %c0_i32 : i32, i32, i32
  }
  func.func @transform_4(%arg0: i32, %arg1: i32) -> (i32, i32, i32) {
    %c0_i32 = arith.constant 0 : i32
    %c0_i32_0 = arith.constant 0 : i32
    return %arg0, %arg1, %c0_i32 : i32, i32, i32
  }
  func.func @transform_5(%arg0: i32, %arg1: i32) -> (i32, i32, i32) {
    %c0_i32 = arith.constant 0 : i32
    %c0_i32_0 = arith.constant 0 : i32
    return %arg0, %c0_i32, %arg1 : i32, i32, i32
  }
  func.func @transform_6(%arg0: i32, %arg1: i32) -> (i32, i32, i32) {
    %c0_i32 = arith.constant 0 : i32
    %c0_i32_0 = arith.constant 0 : i32
    %c0_i32_1 = arith.constant 0 : i32
    return %arg0, %c0_i32, %c0_i32_0 : i32, i32, i32
  }
  func.func @transform_7(%arg0: i32, %arg1: i32) -> (i32, i32, i32) {
    %c0_i32 = arith.constant 0 : i32
    %c0_i32_0 = arith.constant 0 : i32
    %c0_i32_1 = arith.constant 0 : i32
    return %arg0, %c0_i32, %c0_i32_0 : i32, i32, i32
  }
}

</mosaic_0001>

<bundles_post_ra>
// kernel: tpu_custom_call.1
= control target key start
LH: loop header
LB: loop body
LE: loop exit
PB: predicated region body
PF: predicated region fallthrough
CT: control target
= control target key end

     0   :  { %s1820_s0 = inlined_call_operand.vmem [shape: f32[2,32,8], index: 0, kind: input, shape index: {}]   ;;  %s1821_s1 = inlined_call_operand.vmem [shape: f32[128,32], index: 1, kind: input, shape index: {}]   ;;  %s1822_s2 = inlined_call_operand.vmem [shape: f32[1,128], index: 2, kind: input, shape index: {}]   ;;  %s1823_s3 = inlined_call_operand.hbm [shape: f32[2,8,128], index: 3, kind: output, shape index: {0}]   ;;  %s1824_s4 = inlined_call_operand.hbm [shape: bf16[2,8,128], index: 4, kind: output, shape index: {1}]   ;;  %s1825_s5 = inlined_call_operand.vmem [shape: f32[2,32,8], index: 5, kind: output, shape index: {2}]   ;;  %s1826_s6 = inlined_call_operand.hbm [shape: f32[2,1,128], index: 6, kind: output, shape index: {3}]   ;;  %s1827_s7 = inlined_call_operand.hbm [shape: f32[2,1,32], index: 7, kind: output, shape index: {4}]  }
   0x1   :  { %1832 = sst [smem:[#allocation13_spill]] %s1820_s0 }
   0x2   :  { %1833 = sst [smem:[#allocation14_spill]] %s1821_s1 }
   0x3   :  { %1834 = sst [smem:[#allocation15_spill]] %s1822_s2 }
   0x4   :  { %13 = vsyncpa [#allocation3], 0 }
   0x5   :  { %15 = vsyncpa [#allocation3 + $0x1], 0 }
   0x6   :  { %16 = vsyncpa [#allocation5], 0 }
   0x7   :  { %18 = vsyncpa [#allocation5 + $0x1], 0 }
   0x8   :  { %19 = vsyncpa [#allocation8], 0 }
   0x9   :  { %21 = vsyncpa [#allocation8 + $0x1], 0  ;;  %s1480_s24 = smov 0   ;;  %s1482_s25 = smov 0  }
   0xa   :  { %s1484_s26 = smov 0   ;;  %s1486_s27 = smov 0  }
   0xb   :  { %s1488_s28 = smov 0   ;;  %s1490_s29 = smov 0  }
   0xc LB: > { %s985_s30 = sadd.s32 4294967295, %s1430_s29   ;;  %s1828_s8 = sadd.s32 4294967294, %s1430_s29   ;;  %s1430_s29 = sphi %s1490_s29, %s27_s29   ;;  %s1426_s28 = sphi %s1488_s28, %s1852_s28   ;;  %s1422_s27 = sphi %s1486_s27, %s1851_s27   ;;  %s1418_s26 = sphi %s1484_s26, %s1850_s26   ;;  %s1414_s25 = sphi %s1482_s25, %s1849_s25   ;;  %s1410_s24 = sphi %s1480_s24, %s1848_s24  }
   0xd   : > { %s39_s9 = sadd.s32 1, %s1426_s28  ;;  %s118_s10 = sadd.s32 1, %s1418_s26 }
   0xe   : > { %p41_p0 = scmp.ge.s32.totalorder %s39_s9, 2  ;;  %p128_p1 = scmp.ne.s32.totalorder %s1418_s26, %s1414_s25 }
   0xf   : > { %p129_p2 = scmp.eq.s32.totalorder %s985_s30, 1  ;;  %p134_p3 = scmp.ne.s32.totalorder %s1414_s25, %s1410_s24 }
  0x10   : > { %s1854_s9 = smov (%p41_p0, %s39_s9), 0  ;;  %p135_p5 = scmp.eq.s32.totalorder %s1828_s8, 1 }
  0x11   : > { %1835 = sst [smem:[#allocation12_spill]] %s1854_s9  ;;  %p1522_p4 = por %p129_p2, %p128_p1 }
  0x12   : > { %s113_s12 = ssub.s32 %s1426_s28, %s1854_s9  ;;  %p989_p6 = scmp.ge.s32.totalorder %s1430_s29, 1 }
  0x13   : > { %p116_p7 = scmp.eq.s32.totalorder %s113_s12, 0  ;;  %p1531_p8 = por %p135_p5, %p134_p3 }
  0x14   : > { %p278_p9 = scmp.lt.s32.totalorder %s1430_s29, 3 }
  0x15   : > { %s1537_s14 = scalar_select %p116_p7, %s1418_s26, %s118_s10  }
  0x16   : > { %p279_p10 = pnand %p989_p6, %p278_p9 }
  0x17   : > { %p334_p11 = scmp.lt.s32.totalorder (!%p279_p10), %s1422_s27, 1  ;;  %s1838_s1 = sld [smem:[#allocation14_spill]] (!%p279_p10)  ;;  %vm410_vm0 = vcmask (!%p279_p10), 261120   ;;  %v1432_v2 = vmov (!%p279_p10), 0.0|0.0   ;;  %vm1433_vm2 = vmmov (!%p279_p10), 0   ;;  %v1434_v7 = vmov (!%p279_p10), 0.0  }
  0x18   : > { %282 = sbr.rel (%p279_p10) target bundleno = 1174 (0x496), region = 32  ;;  %1130 = vmatprep.subr.bf16.mxu0 (!%p279_p10), %v1432_v2  ;;  %vm1549_vm1 = vmpackc.low (!%p279_p10), %vm410_vm0, %vm410_vm0  ;;  %1162 = vmatprep.subr.bf16.mxu1 (!%p279_p10), %v1432_v2  ;;  %s1841_s0 = sld [smem:[#allocation13_spill]] (!%p279_p10)  ;;  %v546_v41 = vlaneseq (!%p279_p10)  ;;  %v1435_v57 = vmov (!%p279_p10), 1.0   ;;  %vm355_vm6 = vcmask (!%p279_p10), 253952  }
  0x19   : > { %1092 = vmatprep.mubr.msk.f32.mxu0 (!%p279_p10), %vm1433_vm2, %v1434_v7  ;;  %1127 = vmatprep.mubr.msk.f32.mxu1 (!%p279_p10), %vm1433_vm2, %v1434_v7  ;;  %s1640_s15 = sand.u32 (!%p279_p10), 1, %s1414_s25   ;;  %s1842_s2 = sld [smem:[#allocation15_spill]] (!%p279_p10) }
  0x1a   : > { %s990_s18 = sshll.u32 (!%p279_p10), %s1640_s15, 3  ;;  %v547_v42 = vand.u32 (!%p279_p10), 127, %v546_v41  ;;  %s1650_s21 = scalar_lea.vmem (!%p279_p10), [#allocation6], %s1640_s15 }
  0x1b   : > { %s1646_s20 = scalar_lea.vmem (!%p279_p10), [#allocation2], %s990_s18  ;;  %354 = vst [vmem:[%s1650_s21] sm:$0x1] (!%p279_p10), %v1434_v7  ;;  %s991_s22 = sshll.u32 (!%p279_p10), %s1640_s15, 2 }
  0x1c   : > { %s311_s23 = scalar_lea.vmem (!%p279_p10), [#allocation4], %s991_s22  ;;  %s1659_s12 = scalar_lea.vmem (!%p279_p10), [#allocation7], %s1640_s15 }
  0x1d   : > { %v393_v0 = vld [vmem:[%s1838_s1] sm:$0xff] (!%p279_p10)  ;;  %v394_v1 = vld [vmem:[%s1838_s1 + $0x8] sm:$0xff] (!%p279_p10)  ;;  %v395_v5 = vld [vmem:[%s1838_s1 + $0x10] sm:$0xff] (!%p279_p10)  ;;  %356 = vst.msk [vmem:[%s1659_s12] sm:$0x1] (!%p279_p10), %vm355_vm6, %v1434_v7  ;;  %s1019_s17 = sshll.u32 (!%p279_p10), %s1422_s27, 6 }
  0x1e   : > { %v1131_v3 = vpack.c.bf16 (!%p279_p10), %v394_v1, %v393_v0  ;;  %v396_v6 = vld [vmem:[%s1838_s1 + $0x18] sm:$0xff] (!%p279_p10)  ;;  %v397_v10 = vld [vmem:[%s1838_s1 + $0x20] sm:$0xff] (!%p279_p10)  ;;  %v398_v11 = vld [vmem:[%s1838_s1 + $0x28] sm:$0xff] (!%p279_p10)  ;;  %s1673_s8 = scalar_lea.hbm (!%p279_p10), %s1824_s4, %s1019_s17 }
  0x1f   : > { %s1555_s19 = scalar_select %p334_p11, %s1422_s27, 1  ;;  %v1135_v8 = vpack.c.bf16 %v396_v6, %v395_v5  ;;  %v1139_v13 = vpack.c.bf16 %v398_v11, %v397_v10  ;;  %v399_v14 = vld [vmem:[%s1838_s1 + $0x30] sm:$0xff]  ;;  %v400_v15 = vld [vmem:[%s1838_s1 + $0x38] sm:$0xff]  ;;  %v401_v18 = vld [vmem:[%s1838_s1 + $0x40] sm:$0xff] }
  0x20   : > { %1133 = vmatpush3.bf16.xpose.msk.msra.mxu0 %vm1549_vm1, %v1131_v3  ;;  %1164 = vmatpush3.bf16.msra.mxu1 %v1131_v3  ;;  %v1143_v17 = vpack.c.bf16 %v400_v15, %v399_v14  ;;  %v402_v19 = vld [vmem:[%s1838_s1 + $0x48] sm:$0xff]  ;;  %v403_v22 = vld [vmem:[%s1838_s1 + $0x50] sm:$0xff]  ;;  %v404_v23 = vld [vmem:[%s1838_s1 + $0x58] sm:$0xff] }
  0x21   : > { %s1829_s10 = sshll.u32 %s1555_s19, 5  ;;  %1134 = vmatprep.subr.bf16.mxu0 %v1432_v2  ;;  %1165 = vmatprep.subr.bf16.mxu1 %v1432_v2  ;;  %v1147_v21 = vpack.c.bf16 %v402_v19, %v401_v18  ;;  %v1151_v24 = vpack.c.bf16 %v404_v23, %v403_v22  ;;  %v405_v25 = vld [vmem:[%s1838_s1 + $0x60] sm:$0xff]  ;;  %v406_v26 = vld [vmem:[%s1838_s1 + $0x68] sm:$0xff]  ;;  %v407_v28 = vld [vmem:[%s1838_s1 + $0x70] sm:$0xff] }
  0x22   : > { %s341_s16 = scalar_lea.vmem %s1841_s0, %s1829_s10  ;;  %v1155_v27 = vpack.c.bf16 %v406_v26, %v405_v25  ;;  %v408_v29 = vld [vmem:[%s1838_s1 + $0x78] sm:$0xff]  ;;  %v1013_v34 = vld [vmem:[%s1842_s2] ss:$0 sm:$0xff]  ;;  %s760_s10 = sshll.u32 %s311_s23, 4  ;;  %s1675_s10 = int_to_ptr.vmem [resolvable:$true] %s760_s10 }
  0x23   : > { %v357_v9 = vld [vmem:[%s341_s16] sm:$0xff]  ;;  %v358_v12 = vld [vmem:[%s341_s16 + $0x8] sm:$0xff]  ;;  %v359_v16 = vld [vmem:[%s341_s16 + $0x10] sm:$0xff]  ;;  %v1159_v30 = vpack.c.bf16 %v408_v29, %v407_v28  ;;  %s1260_s2 = scalar_lea.vmem %s1675_s10, 64 }
  0x24   : > { %361 = vxpose.xlu0.b32.start [1/4] (short) (narrow) %v357_v9, 8  ;;  %1167 = vmatpush3.bf16.msra.mxu1 %v1135_v8  ;;  %v360_v20 = vld [vmem:[%s341_s16 + $0x18] sm:$0xff]  ;;  %v684_v0 = vld [vmem:[%s1650_s21] sm:$0x1]  ;;  %s1667_s16 = sand.u32 1, %s985_s30   ;;  %p1261_p12 = scmp.ne.s32.totalorder %s1675_s10, %s1260_s2 }
  0x25   : > { %1168 = vmatprep.subr.bf16.mxu1 %v1432_v2  ;;  %s1831_s1 = scalar_lea.sflag [#allocation5], %s1667_s16  ;;  %s1436_s30 = smov [#allocation4]  }
  0x26   : > { %p1262_p13 = pnand %p1261_p12, %p1522_p4  ;;  %s1264_s9 = sshll.u32 %s1436_s30, 4  ;;  %s1265_s9 = int_to_ptr.vmem [resolvable:$false] %s1264_s9 }
  0x27   : > { %s1266_s18 = scalar_lea.vmem %s1265_s9, 128  ;;  %p1267_p1 = scmp.lt.s32.totalorder %s1675_s10, %s1265_s9 }
  0x28   : > { %362 = vxpose.xlu0.b32.cont [2/4] (short) (narrow) %v358_v12, 8  ;;  %1137 = vmatpush3.bf16.xpose.msk.msra.mxu0 %vm1549_vm1, %v1135_v8  ;;  %p1263_p0 = pneg %p1262_p13  ;;  %p1268_p2 = scmp.lt.s32.totalorder %s1266_s18, %s1260_s2 }
  0x29   : > { %1138 = vmatprep.subr.bf16.mxu0 %v1432_v2  ;;  %1170 = vmatpush3.bf16.msra.mxu1 %v1139_v13 }
  0x2a   : > { %1171 = vmatprep.subr.bf16.mxu1 %v1432_v2  ;;  %p1269_p3 = por %p1268_p2, %p1267_p1 }
  0x2c   : > { %363 = vxpose.xlu0.b32.cont [3/4] (short) (narrow) %v359_v16, 8  ;;  %p1270_p5 = pnand %p1269_p3, %p1263_p0 }
  0x2d   : > { %1173 = vmatpush3.bf16.msra.mxu1 %v1143_v17 }
  0x2e   : > { %1174 = vmatprep.subr.bf16.mxu1 %v1432_v2 }
  0x30   : > { %364 = vxpose.xlu0.b32.end [4/4] (short) (narrow) %v360_v20, 8  ;;  %1141 = vmatpush3.bf16.xpose.msk.msra.mxu0 %vm1549_vm1, %v1139_v13 }
  0x31   : > { %1142 = vmatprep.subr.bf16.mxu0 %v1432_v2  ;;  %1176 = vmatpush3.bf16.msra.mxu1 %v1147_v21 }
  0x32   : > { %1177 = vmatprep.subr.bf16.mxu1 %v1432_v2 }
  0x35   : > { %1179 = vmatpush3.bf16.msra.mxu1 %v1151_v24 }
  0x36   : > { %1180 = vmatprep.subr.bf16.mxu1 %v1432_v2 }
  0x38   : > { %1145 = vmatpush3.bf16.xpose.msk.msra.mxu0 %vm1549_vm1, %v1143_v17 }
  0x39   : > { %1146 = vmatprep.subr.bf16.mxu0 %v1432_v2  ;;  %1182 = vmatpush3.bf16.msra.mxu1 %v1155_v27 }
  0x3a   : > { %1183 = vmatprep.subr.bf16.mxu1 %v1432_v2 }
  0x3d   : > { %1185 = vmatpush3.bf16.msra.mxu1 %v1159_v30 }
  0x40   : > { %1149 = vmatpush3.bf16.xpose.msk.msra.mxu0 %vm1549_vm1, %v1147_v21 }
  0x41   : > { %1150 = vmatprep.subr.bf16.mxu0 %v1432_v2 }
  0x48   : > { %1153 = vmatpush3.bf16.xpose.msk.msra.mxu0 %vm1549_vm1, %v1151_v24 }
  0x49   : > { %1154 = vmatprep.subr.bf16.mxu0 %v1432_v2 }
  0x50   : > { %1157 = vmatpush3.bf16.xpose.msk.msra.mxu0 %vm1549_vm1, %v1155_v27 }
  0x51   : > { %1158 = vmatprep.subr.bf16.mxu0 %v1432_v2 }
  0x58   : > { %1161 = vmatpush3.bf16.xpose.msk.msra.mxu0 %vm1549_vm1, %v1159_v30 }
  0xa4   : > { %v377_v31 = vpop.trf.xlu0 }
  0xa5   : > { %1093 = vmatmul.mubr.msk.f32.vlgmr.msra.gmra.mrb[0].mxu0 %vm410_vm0, %v377_v31  ;;  %v532_v32 = vmul.f32 %v377_v31, %v377_v31 }
  0xa7   : > { %v533_v33 = vsel %vm410_vm0, %v532_v32, 0.0 }
  0xa8   : > { %534 = vadd.xlane.f32.xlu1 %v533_v33 }
 0x135   : > { %v535_v35 = vpop.xlane.xlu1 %534 }
 0x136   : > { %v542_v37 = vadd.f32 %v1013_v34, %v535_v35 }
 0x178   : > { %v528_v36 = vpop.f32.mrb[0].mxu0 }
 0x179   : > { %v543_v38 = vmul.f32 2.0, %v528_v36  ;;  %v1094_v39 = vpop.f32.mrb[1].mxu0 }
 0x17b   : > { %v544_v40 = vsub.f32 %v542_v37, %v543_v38 }
 0x17d   : > { %548 = vmin.xlane.f32.xlu1 %v544_v40  ;;  %545 = vst [vmem:[%s1646_s20] sm:$0xff] %v544_v40 }
 0x20a   : > { %v549_v43 = vpop.xlane.xlu1 %548 }
 0x20b   : > { %vm550_vm3 = vcmp.eq.f32.partialorder %v544_v40, %v549_v43 }
 0x20c   : > { %v551_v44 = vsel %vm550_vm3, %v547_v42, 128 }
 0x20d   : > { %v553_v45 = vshra.s32 %v551_v44, 16  ;;  %v552_v47 = vand.u32 65535, %v551_v44 }
 0x20f   : > { %v555_v46 = vcvt.s32.f32 %v553_v45  ;;  %v554_v49 = vcvt.s32.f32 %v552_v47 }
 0x211   : > { %556 = vmin.xlane.f32.xlu1 %v555_v46 }
 0x29e   : > { %v557_v48 = vpop.xlane.xlu1 %556 }
 0x29f   : > { %vm558_vm4 = vcmp.eq.f32.partialorder %v555_v46, %v557_v48  ;;  %v563_v51 = vcvt.f32.s32 %v557_v48 }
 0x2a0   : > { %v559_v50 = vsel %vm558_vm4, %v554_v49, inf }
 0x2a1   : > { %560 = vmin.xlane.f32.xlu1 %v559_v50  ;;  %v564_v53 = vshll.u32 %v563_v51, 16 }
 0x32e   : > { %v561_v52 = vpop.xlane.xlu1 %560 }
 0x32f   : > { %v562_v54 = vcvt.f32.s32 %v561_v52 }
 0x331   : > { %v565_v55 = vadd.s32 %v564_v53, %v562_v54 }
 0x333   : > { %vm566_vm5 = vcmp.eq.s32.totalorder %v547_v42, %v565_v55 }
 0x334   : > { %v1014_v56 = vsel %vm566_vm5, 1.0, %v1434_v7  ;;  %1128 = vmatmul.mubr.msk.f32.vlgmr.msra.gmra.mrb[0].mxu1 %vm566_vm5, %v1435_v57 }
 0x335   : > { %v688_v58 = vrot.slane %v1014_v56, 4  ;;  %v569_v59 = vpack.c.bf16 %v1014_v56, %v1014_v56 }
 0x337   : > { %v689_v60 = vadd.f32 %v1014_v56, %v688_v58  ;;  %570 = vst [vmem:[%s311_s23] sm:$0xf] %v569_v59 }
 0x339   : > { %v690_v61 = vrot.slane %v689_v60, 2 }
 0x33b   : > { %v691_v62 = vadd.f32 %v690_v61, %v689_v60 }
 0x33d   : > { %v692_v63 = vrot.slane %v691_v62, 1 }
 0x33f   : > { %v693_v1 = vadd.f32 %v692_v63, %v691_v62 }
 0x341   : > { %v694_v2 = vadd.f32 %v693_v1, %v684_v0 }
 0x343   : > { %695 = vst [vmem:[%s1650_s21] sm:$0x1] %v694_v2 }
 0x407   : > { %v637_v3 = vpop.f32.mrb[0].mxu1 }
 0x408   : > { %v697_v4 = vsub.f32 %v637_v3, %v377_v31  ;;  %641 = vxpose.xlu0.b32.start.end [1/1] (short) (narrow) %v637_v3, 32  ;;  %v1129_v5 = vpop.f32.mrb[1].mxu1 }
 0x40a   : > { %v698_v6 = vmul.f32 %v697_v4, %v697_v4 }
 0x40c   : > { %v700_v8 = vsel %vm410_vm0, %v698_v6, 0.0 }
 0x40d   : > { %v701_v9 = vrot.slane %v700_v8, 4 }
 0x40f   : > { %v702_v10 = vadd.f32 %v701_v9, %v700_v8 }
 0x411   : > { %v703_v11 = vrot.slane %v702_v10, 2 }
 0x413   : > { %v704_v12 = vadd.f32 %v703_v11, %v702_v10 }
 0x415   : > { %v705_v7 = vrot.slane %v704_v12, 1 }
 0x416   : > { %1273 = shalt.err (!%p1270_p5)
}
 0x417   : > { %s1274_s23 = scalar_lea.hbm %s1673_s8, 64  ;;  %s1278_s30 = scalar_lea.hbm %s1824_s4, 128 }
 0x418   : > { %p1275_p6 = scmp.ne.s32.totalorder %s1673_s8, %s1274_s23  ;;  %p1279_p10 = scmp.lt.u32.totalorder %s1673_s8, %s1824_s4 }
 0x419   : > { %p1280_p11 = scmp.lt.u32.totalorder %s1278_s30, %s1274_s23  ;;  %p1282_p13 = scmp.lt.u32.totalorder %s1274_s23, %s1673_s8 }
 0x41a   : > { %p1276_p7 = pnand %p1275_p6, %p1522_p4 }
 0x41b   : > { %p1281_p12 = por %p1280_p11, %p1279_p10 }
 0x41c   : > { %p1277_p9 = pneg %p1276_p7 }
 0x41d   : > { %p1283_p0 = por %p1282_p13, %p1281_p12 }
 0x41f   : > { %p1284_p1 = pnand %p1283_p0, %p1277_p9 }
 0x421   : > { %1287 = shalt.err (!%p1284_p1)
}
 0x422   : > { %1187 = dma.vmem_to_hbm [thread:$0]  (%p1522_p4), %s1675_s10, 64, %s1673_s8, %s1831_s1   ;;  %v696_v13 = vld [vmem:[%s1659_s12] sm:$0x1]  ;;  %v706_v14 = vadd.f32 %v705_v7, %v704_v12 }
 0x423   : > { %s1843_s0 = sshll.u32 %s1422_s27, 7  ;;  %s746_s17 = sshll.u32 %s1646_s20, 4  ;;  %s1711_s17 = int_to_ptr.vmem [resolvable:$true] %s746_s17 }
 0x424   : > { %s1708_s23 = scalar_lea.hbm %s1823_s3, %s1843_s0  ;;  %s1020_s22 = sshll.u32 %s1422_s27, 4 }
 0x425   : > { %s711_s30 = scalar_lea.sflag [#allocation3], %s1640_s15  ;;  %s1288_s9 = scalar_lea.vmem %s1711_s17, 128 }
 0x426   : > { %p1289_p2 = scmp.ne.s32.totalorder %s1711_s17, %s1288_s9  ;;  %s1437_s8 = smov [#allocation2]  }
 0x427   : > { %s1292_s10 = sshll.u32 %s1437_s8, 4  ;;  %s1293_s10 = int_to_ptr.vmem [resolvable:$false] %s1292_s10 }
 0x428   : > { %p1290_p3 = pnand %p1289_p2, %p1522_p4  ;;  %s1294_s1 = scalar_lea.vmem %s1293_s10, 256 }
 0x429   : > { %p1295_p6 = scmp.lt.s32.totalorder %s1711_s17, %s1293_s10  ;;  %p1296_p7 = scmp.lt.s32.totalorder %s1294_s1, %s1288_s9 }
 0x42a   : > { %p1291_p5 = pneg %p1290_p3 }
 0x42b   : > { %p1297_p9 = por %p1296_p7, %p1295_p6 }
 0x42d   : > { %p1298_p10 = pnand %p1297_p9, %p1291_p5 }
 0x42f   : > { %1301 = shalt.err (!%p1298_p10)
}
 0x430   : > { %s1302_s20 = scalar_lea.hbm %s1708_s23, 128  ;;  %s1306_s18 = scalar_lea.hbm %s1823_s3, 256 }
 0x431   : > { %p1303_p11 = scmp.ne.s32.totalorder %s1708_s23, %s1302_s20  ;;  %p1307_p0 = scmp.lt.u32.totalorder %s1708_s23, %s1823_s3 }
 0x432   : > { %p1308_p1 = scmp.lt.u32.totalorder %s1306_s18, %s1302_s20  ;;  %p1310_p3 = scmp.lt.u32.totalorder %s1302_s20, %s1708_s23 }
 0x433   : > { %p1304_p12 = pnand %p1303_p11, %p1522_p4 }
 0x434   : > { %p1309_p2 = por %p1308_p1, %p1307_p0 }
 0x435   : > { %p1305_p13 = pneg %p1304_p12 }
 0x436   : > { %p1311_p5 = por %p1310_p3, %p1309_p2 }
 0x438   : > { %p1312_p6 = pnand %p1311_p5, %p1305_p13 }
 0x43a   : > { %1315 = shalt.err (!%p1312_p6)
}
 0x43b   : > { %1186 = dma.vmem_to_hbm [thread:$0]  (%p1522_p4), %s1711_s17, 128, %s1708_s23, %s711_s30   ;;  %v707_v15 = vadd.f32 %v706_v14, %v696_v13 }
 0x43c   : > { %s1741_s0 = scalar_lea.hbm %s1826_s6, %s1020_s22  ;;  %s776_s20 = sshll.u32 %s1650_s21, 4  ;;  %s777_s20 = int_to_ptr.vmem [resolvable:$true] %s776_s20 }
 0x43d   : > { %709 = vst.msk [vmem:[%s1659_s12] sm:$0x1] %vm355_vm6, %v707_v15  ;;  %s1316_s2 = scalar_lea.vmem %s777_s20, 16  ;;  %s1438_s18 = smov [#allocation6]  }
 0x43e   : > { %p1317_p7 = scmp.ne.s32.totalorder %s777_s20, %s1316_s2  ;;  %s1320_s8 = sshll.u32 %s1438_s18, 4  ;;  %s1321_s8 = int_to_ptr.vmem [resolvable:$false] %s1320_s8 }
 0x43f   : > { %s1322_s23 = scalar_lea.vmem %s1321_s8, 32  ;;  %p1323_p11 = scmp.lt.s32.totalorder %s777_s20, %s1321_s8 }
 0x440   : > { %p1318_p9 = pnand %p1317_p7, %p1522_p4  ;;  %p1324_p12 = scmp.lt.s32.totalorder %s1322_s23, %s1316_s2 }
 0x442   : > { %p1319_p10 = pneg %p1318_p9  ;;  %p1325_p13 = por %p1324_p12, %p1323_p11 }
 0x444   : > { %p1326_p0 = pnand %p1325_p13, %p1319_p10 }
 0x446   : > { %1329 = shalt.err (!%p1326_p0)
}
 0x447   : > { %s1330_s21 = scalar_lea.hbm %s1741_s0, 16  ;;  %s1334_s10 = scalar_lea.hbm %s1826_s6, 32 }
 0x448   : > { %p1331_p1 = scmp.ne.s32.totalorder %s1741_s0, %s1330_s21  ;;  %p1335_p5 = scmp.lt.u32.totalorder %s1741_s0, %s1826_s6 }
 0x449   : > { %p1336_p6 = scmp.lt.u32.totalorder %s1334_s10, %s1330_s21  ;;  %p1338_p9 = scmp.lt.u32.totalorder %s1330_s21, %s1741_s0 }
 0x44a   : > { %p1332_p2 = pnand %p1331_p1, %p1522_p4 }
 0x44b   : > { %p1337_p7 = por %p1336_p6, %p1335_p5 }
 0x44c   : > { %p1333_p3 = pneg %p1332_p2 }
 0x44d   : > { %p1339_p10 = por %p1338_p9, %p1337_p7 }
 0x44f   : > { %p1340_p11 = pnand %p1339_p10, %p1333_p3 }
 0x451   : > { %1343 = shalt.err (!%p1340_p11)
}
 0x452   : > { %s1844_s2 = scalar_lea.sflag [#allocation5], %s1667_s16  ;;  %s1770_s23 = scalar_lea.hbm %s1827_s7, %s1020_s22 }
 0x453   : > { %1188 = dma.vmem_to_hbm [thread:$0]  (%p1522_p4), %s777_s20, 16, %s1741_s0, %s1844_s2  }
 0x454   : > { %s789_s21 = sshll.u32 %s1659_s12, 4  ;;  %s733_s17 = scalar_lea.sflag [#allocation8], %s1640_s15  ;;  %s790_s21 = int_to_ptr.vmem [resolvable:$true] %s789_s21 }
 0x455   : > { %s1344_s30 = scalar_lea.vmem %s790_s21, 16  ;;  %s1439_s16 = smov [#allocation7]  }
 0x456   : > { %p1345_p12 = scmp.ne.s32.totalorder %s790_s21, %s1344_s30  ;;  %s1348_s10 = sshll.u32 %s1439_s16, 4  ;;  %s1349_s10 = int_to_ptr.vmem [resolvable:$false] %s1348_s10 }
 0x457   : > { %s1350_s1 = scalar_lea.vmem %s1349_s10, 32  ;;  %p1351_p1 = scmp.lt.s32.totalorder %s790_s21, %s1349_s10 }
 0x458   : > { %p1346_p13 = pnand %p1345_p12, %p1522_p4  ;;  %p1352_p2 = scmp.lt.s32.totalorder %s1350_s1, %s1344_s30 }
 0x45a   : > { %p1347_p0 = pneg %p1346_p13  ;;  %p1353_p3 = por %p1352_p2, %p1351_p1 }
 0x45c   : > { %p1354_p5 = pnand %p1353_p3, %p1347_p0 }
 0x45e   : > { %1357 = shalt.err (!%p1354_p5)
}
 0x45f   : > { %s1358_s27 = scalar_lea.hbm %s1770_s23, 16  ;;  %s1362_s22 = scalar_lea.hbm %s1827_s7, 32 }
 0x460   : > { %p1359_p6 = scmp.ne.s32.totalorder %s1770_s23, %s1358_s27  ;;  %p1363_p10 = scmp.lt.u32.totalorder %s1770_s23, %s1827_s7 }
 0x461   : > { %p1364_p11 = scmp.lt.u32.totalorder %s1362_s22, %s1358_s27  ;;  %p1366_p13 = scmp.lt.u32.totalorder %s1358_s27, %s1770_s23 }
 0x462   : > { %p1360_p7 = pnand %p1359_p6, %p1522_p4 }
 0x463   : > { %p1365_p12 = por %p1364_p11, %p1363_p10 }
 0x464   : > { %p1361_p9 = pneg %p1360_p7 }
 0x465   : > { %p1367_p0 = por %p1366_p13, %p1365_p12 }
 0x467   : > { %p1368_p1 = pnand %p1367_p0, %p1361_p9 }
 0x469   : > { %1371 = shalt.err (!%p1368_p1)
}
 0x46a   : > { %1189 = dma.vmem_to_hbm [thread:$0]  (%p1522_p4), %s790_s21, 16, %s1770_s23, %s733_s17   ;;  %vm673_vm7 = vcmask 64512  }
 0x46b   : > { %s1845_s9 = sshll.u32 %s1555_s19, 5 }
 0x46c   : > { %s349_s8 = scalar_lea.vmem %s1825_s5, %s1845_s9 }
 0x488   : > { %v657_v16 = vpop.trf.xlu0 }
 0x489   : > { %674 = vst.msk [vmem:[%s349_s8] sm:$0xff] %vm673_vm7, %v657_v16 }
 0x48c   : > { %v658_v17 = vpop.trf.xlu0 }
 0x48d   : > { %675 = vst.msk [vmem:[%s349_s8 + $0x8] sm:$0xff] %vm673_vm7, %v658_v17 }
 0x490   : > { %v659_v18 = vpop.trf.xlu0 }
 0x491   : > { %676 = vst.msk [vmem:[%s349_s8 + $0x10] sm:$0xff] %vm673_vm7, %v659_v18 }
 0x494   : > { %v660_v19 = vpop.trf.xlu0 }
 0x495   : > { %677 = vst.msk [vmem:[%s349_s8 + $0x18] sm:$0xff] %vm673_vm7, %v660_v19 }
 0x496 PF: > { %p1207_p2 = scmp.ge.s32.totalorder %s1430_s29, 2  ;;  %s801_s11 = sand.u32 1, %s1410_s24  }
 0x497   : > { %s802_s19 = scalar_lea.sflag [#allocation3], %s801_s11 }
 0x498   : > { %p1195_p4 = pnand %p1207_p2, %p1531_p8 }
 0x49a   : > { %1397 = dma.done.wait (!%p1195_p4), %s802_s19, 128  }
 0x49b   : > { %1399 = vsyncadd (!%p1195_p4), %s802_s19, 4294967168  ;;  %s1846_s23 = sadd.s32 4294967294, %s1430_s29  }
 0x49c   : > { %s810_s21 = sand.u32 1, %s1846_s23  }
 0x49d   : > { %s811_s17 = scalar_lea.sflag [#allocation5], %s810_s21 }
 0x49e   : > { %1401 = dma.done.wait (!%p1195_p4), %s811_s17, 80  }
 0x49f   : > { %1403 = vsyncadd (!%p1195_p4), %s811_s17, 4294967216  ;;  %s839_s30 = scalar_lea.sflag [#allocation8], %s801_s11 }
 0x4a0   : > { %1405 = dma.done.wait (!%p1195_p4), %s839_s30, 16  }
 0x4a1   : > { %1407 = vsyncadd (!%p1195_p4), %s839_s30, 4294967280  ;;  %s27_s29 = sadd.s32 1, %s1430_s29   ;;  %s1847_s13 = sld [smem:[#allocation12_spill]] }
 0x4a2   : > { %p24_p3 = scmp.ge.s32.totalorder %s27_s29, 4   ;;  %s1848_s24 = smov %s1414_s25 }
 0x4a3   : > { %s1849_s25 = smov %s1418_s26  ;;  %s1850_s26 = smov %s1537_s14 }
 0x4a4   : > { %s1851_s27 = smov %s1426_s28  ;;  %26 = sbr.rel (!%p24_p3) target bundleno = 12 (0xc), region = 132 }
 0x4a7   : > { %s1852_s28 = smov %s1847_s13 }
 0x4ab   :  { %843 = vsyncpa [#allocation3], 1 }
 0x4ac   :  { %845 = vsyncpa [#allocation3 + $0x1], 1 }
 0x4ad   :  { %846 = vsyncpa [#allocation5], 1 }
 0x4ae   :  { %848 = vsyncpa [#allocation5 + $0x1], 1 }
 0x4af   :  { %849 = vsyncpa [#allocation8], 1 }
 0x4b0   :  { %851 = vsyncpa [#allocation8 + $0x1], 1 }

// kernel: tpu_custom_call.1
= control target key start
LH: loop header
LB: loop body
LE: loop exit
PB: predicated region body
PF: predicated region fallthrough
CT: control target
= control target key end

     0   :  { %s1820_s0 = inlined_call_operand.vmem [shape: f32[2,32,8], index: 0, kind: input, shape index: {}]   ;;  %s1821_s1 = inlined_call_operand.vmem [shape: f32[128,32], index: 1, kind: input, shape index: {}]   ;;  %s1822_s2 = inlined_call_operand.vmem [shape: f32[1,128], index: 2, kind: input, shape index: {}]   ;;  %s1823_s3 = inlined_call_operand.hbm [shape: f32[2,8,128], index: 3, kind: output, shape index: {0}]   ;;  %s1824_s4 = inlined_call_operand.hbm [shape: bf16[2,8,128], index: 4, kind: output, shape index: {1}]   ;;  %s1825_s5 = inlined_call_operand.vmem [shape: f32[2,32,8], index: 5, kind: output, shape index: {2}]   ;;  %s1826_s6 = inlined_call_operand.hbm [shape: f32[2,1,128], index: 6, kind: output, shape index: {3}]   ;;  %s1827_s7 = inlined_call_operand.hbm [shape: f32[2,1,32], index: 7, kind: output, shape index: {4}]  }
   0x1   :  { %1832 = sst [smem:[#allocation13_spill]] %s1820_s0 }
   0x2   :  { %1833 = sst [smem:[#allocation14_spill]] %s1821_s1 }
   0x3   :  { %1834 = sst [smem:[#allocation15_spill]] %s1822_s2 }
   0x4   :  { %13 = vsyncpa [#allocation3], 0 }
   0x5   :  { %15 = vsyncpa [#allocation3 + $0x1], 0 }
   0x6   :  { %16 = vsyncpa [#allocation5], 0 }
   0x7   :  { %18 = vsyncpa [#allocation5 + $0x1], 0 }
   0x8   :  { %19 = vsyncpa [#allocation8], 0 }
   0x9   :  { %21 = vsyncpa [#allocation8 + $0x1], 0  ;;  %s1480_s24 = smov 0   ;;  %s1482_s25 = smov 0  }
   0xa   :  { %s1484_s26 = smov 0   ;;  %s1486_s27 = smov 0  }
   0xb   :  { %s1488_s28 = smov 0   ;;  %s1490_s29 = smov 0  }
   0xc LB: > { %s985_s30 = sadd.s32 4294967295, %s1430_s29   ;;  %s1828_s8 = sadd.s32 4294967294, %s1430_s29   ;;  %s1430_s29 = sphi %s1490_s29, %s27_s29   ;;  %s1426_s28 = sphi %s1488_s28, %s1852_s28   ;;  %s1422_s27 = sphi %s1486_s27, %s1851_s27   ;;  %s1418_s26 = sphi %s1484_s26, %s1850_s26   ;;  %s1414_s25 = sphi %s1482_s25, %s1849_s25   ;;  %s1410_s24 = sphi %s1480_s24, %s1848_s24  }
   0xd   : > { %s39_s9 = sadd.s32 1, %s1426_s28  ;;  %s118_s10 = sadd.s32 1, %s1418_s26 }
   0xe   : > { %p41_p0 = scmp.ge.s32.totalorder %s39_s9, 2  ;;  %p128_p1 = scmp.ne.s32.totalorder %s1418_s26, %s1414_s25 }
   0xf   : > { %p129_p2 = scmp.eq.s32.totalorder %s985_s30, 1  ;;  %p134_p3 = scmp.ne.s32.totalorder %s1414_s25, %s1410_s24 }
  0x10   : > { %s1854_s9 = smov (%p41_p0, %s39_s9), 0  ;;  %p135_p5 = scmp.eq.s32.totalorder %s1828_s8, 1 }
  0x11   : > { %1835 = sst [smem:[#allocation12_spill]] %s1854_s9  ;;  %p1522_p4 = por %p129_p2, %p128_p1 }
  0x12   : > { %s113_s12 = ssub.s32 %s1426_s28, %s1854_s9  ;;  %p989_p6 = scmp.ge.s32.totalorder %s1430_s29, 1 }
  0x13   : > { %p116_p7 = scmp.eq.s32.totalorder %s113_s12, 0  ;;  %p1531_p8 = por %p135_p5, %p134_p3 }
  0x14   : > { %p278_p9 = scmp.lt.s32.totalorder %s1430_s29, 3 }
  0x15   : > { %s1537_s14 = scalar_select %p116_p7, %s1418_s26, %s118_s10  }
  0x16   : > { %p279_p10 = pnand %p989_p6, %p278_p9 }
  0x17   : > { %p334_p11 = scmp.lt.s32.totalorder (!%p279_p10), %s1422_s27, 1  ;;  %s1838_s1 = sld [smem:[#allocation14_spill]] (!%p279_p10)  ;;  %vm410_vm0 = vcmask (!%p279_p10), 261120   ;;  %v1432_v2 = vmov (!%p279_p10), 0.0|0.0   ;;  %vm1433_vm2 = vmmov (!%p279_p10), 0   ;;  %v1434_v7 = vmov (!%p279_p10), 0.0  }
  0x18   : > { %282 = sbr.rel (%p279_p10) target bundleno = 1174 (0x496), region = 32  ;;  %1130 = vmatprep.subr.bf16.mxu0 (!%p279_p10), %v1432_v2  ;;  %vm1549_vm1 = vmpackc.low (!%p279_p10), %vm410_vm0, %vm410_vm0  ;;  %1162 = vmatprep.subr.bf16.mxu1 (!%p279_p10), %v1432_v2  ;;  %s1841_s0 = sld [smem:[#allocation13_spill]] (!%p279_p10)  ;;  %v546_v41 = vlaneseq (!%p279_p10)  ;;  %v1435_v57 = vmov (!%p279_p10), 1.0   ;;  %vm355_vm6 = vcmask (!%p279_p10), 253952  }
  0x19   : > { %1092 = vmatprep.mubr.msk.f32.mxu0 (!%p279_p10), %vm1433_vm2, %v1434_v7  ;;  %1127 = vmatprep.mubr.msk.f32.mxu1 (!%p279_p10), %vm1433_vm2, %v1434_v7  ;;  %s1640_s15 = sand.u32 (!%p279_p10), 1, %s1414_s25   ;;  %s1842_s2 = sld [smem:[#allocation15_spill]] (!%p279_p10) }
  0x1a   : > { %s990_s18 = sshll.u32 (!%p279_p10), %s1640_s15, 3  ;;  %v547_v42 = vand.u32 (!%p279_p10), 127, %v546_v41  ;;  %s1650_s21 = scalar_lea.vmem (!%p279_p10), [#allocation6], %s1640_s15 }
  0x1b   : > { %s1646_s20 = scalar_lea.vmem (!%p279_p10), [#allocation2], %s990_s18  ;;  %354 = vst [vmem:[%s1650_s21] sm:$0x1] (!%p279_p10), %v1434_v7  ;;  %s991_s22 = sshll.u32 (!%p279_p10), %s1640_s15, 2 }
  0x1c   : > { %s311_s23 = scalar_lea.vmem (!%p279_p10), [#allocation4], %s991_s22  ;;  %s1659_s12 = scalar_lea.vmem (!%p279_p10), [#allocation7], %s1640_s15 }
  0x1d   : > { %v393_v0 = vld [vmem:[%s1838_s1] sm:$0xff] (!%p279_p10)  ;;  %v394_v1 = vld [vmem:[%s1838_s1 + $0x8] sm:$0xff] (!%p279_p10)  ;;  %v395_v5 = vld [vmem:[%s1838_s1 + $0x10] sm:$0xff] (!%p279_p10)  ;;  %356 = vst.msk [vmem:[%s1659_s12] sm:$0x1] (!%p279_p10), %vm355_vm6, %v1434_v7  ;;  %s1019_s17 = sshll.u32 (!%p279_p10), %s1422_s27, 6 }
  0x1e   : > { %v1131_v3 = vpack.c.bf16 (!%p279_p10), %v394_v1, %v393_v0  ;;  %v396_v6 = vld [vmem:[%s1838_s1 + $0x18] sm:$0xff] (!%p279_p10)  ;;  %v397_v10 = vld [vmem:[%s1838_s1 + $0x20] sm:$0xff] (!%p279_p10)  ;;  %v398_v11 = vld [vmem:[%s1838_s1 + $0x28] sm:$0xff] (!%p279_p10)  ;;  %s1673_s8 = scalar_lea.hbm (!%p279_p10), %s1824_s4, %s1019_s17 }
  0x1f   : > { %s1555_s19 = scalar_select %p334_p11, %s1422_s27, 1  ;;  %v1135_v8 = vpack.c.bf16 %v396_v6, %v395_v5  ;;  %v1139_v13 = vpack.c.bf16 %v398_v11, %v397_v10  ;;  %v399_v14 = vld [vmem:[%s1838_s1 + $0x30] sm:$0xff]  ;;  %v400_v15 = vld [vmem:[%s1838_s1 + $0x38] sm:$0xff]  ;;  %v401_v18 = vld [vmem:[%s1838_s1 + $0x40] sm:$0xff] }
  0x20   : > { %1133 = vmatpush3.bf16.xpose.msk.msra.mxu0 %vm1549_vm1, %v1131_v3  ;;  %1164 = vmatpush3.bf16.msra.mxu1 %v1131_v3  ;;  %v1143_v17 = vpack.c.bf16 %v400_v15, %v399_v14  ;;  %v402_v19 = vld [vmem:[%s1838_s1 + $0x48] sm:$0xff]  ;;  %v403_v22 = vld [vmem:[%s1838_s1 + $0x50] sm:$0xff]  ;;  %v404_v23 = vld [vmem:[%s1838_s1 + $0x58] sm:$0xff] }
  0x21   : > { %s1829_s10 = sshll.u32 %s1555_s19, 5  ;;  %1134 = vmatprep.subr.bf16.mxu0 %v1432_v2  ;;  %1165 = vmatprep.subr.bf16.mxu1 %v1432_v2  ;;  %v1147_v21 = vpack.c.bf16 %v402_v19, %v401_v18  ;;  %v1151_v24 = vpack.c.bf16 %v404_v23, %v403_v22  ;;  %v405_v25 = vld [vmem:[%s1838_s1 + $0x60] sm:$0xff]  ;;  %v406_v26 = vld [vmem:[%s1838_s1 + $0x68] sm:$0xff]  ;;  %v407_v28 = vld [vmem:[%s1838_s1 + $0x70] sm:$0xff] }
  0x22   : > { %s341_s16 = scalar_lea.vmem %s1841_s0, %s1829_s10  ;;  %v1155_v27 = vpack.c.bf16 %v406_v26, %v405_v25  ;;  %v408_v29 = vld [vmem:[%s1838_s1 + $0x78] sm:$0xff]  ;;  %v1013_v34 = vld [vmem:[%s1842_s2] ss:$0 sm:$0xff]  ;;  %s760_s10 = sshll.u32 %s311_s23, 4  ;;  %s1675_s10 = int_to_ptr.vmem [resolvable:$true] %s760_s10 }
  0x23   : > { %v357_v9 = vld [vmem:[%s341_s16] sm:$0xff]  ;;  %v358_v12 = vld [vmem:[%s341_s16 + $0x8] sm:$0xff]  ;;  %v359_v16 = vld [vmem:[%s341_s16 + $0x10] sm:$0xff]  ;;  %v1159_v30 = vpack.c.bf16 %v408_v29, %v407_v28  ;;  %s1260_s2 = scalar_lea.vmem %s1675_s10, 64 }
  0x24   : > { %361 = vxpose.xlu0.b32.start [1/4] (short) (narrow) %v357_v9, 8  ;;  %1167 = vmatpush3.bf16.msra.mxu1 %v1135_v8  ;;  %v360_v20 = vld [vmem:[%s341_s16 + $0x18] sm:$0xff]  ;;  %v684_v0 = vld [vmem:[%s1650_s21] sm:$0x1]  ;;  %s1667_s16 = sand.u32 1, %s985_s30   ;;  %p1261_p12 = scmp.ne.s32.totalorder %s1675_s10, %s1260_s2 }
  0x25   : > { %1168 = vmatprep.subr.bf16.mxu1 %v1432_v2  ;;  %s1831_s1 = scalar_lea.sflag [#allocation5], %s1667_s16  ;;  %s1436_s30 = smov [#allocation4]  }
  0x26   : > { %p1262_p13 = pnand %p1261_p12, %p1522_p4  ;;  %s1264_s9 = sshll.u32 %s1436_s30, 4  ;;  %s1265_s9 = int_to_ptr.vmem [resolvable:$false] %s1264_s9 }
  0x27   : > { %s1266_s18 = scalar_lea.vmem %s1265_s9, 128  ;;  %p1267_p1 = scmp.lt.s32.totalorder %s1675_s10, %s1265_s9 }
  0x28   : > { %362 = vxpose.xlu0.b32.cont [2/4] (short) (narrow) %v358_v12, 8  ;;  %1137 = vmatpush3.bf16.xpose.msk.msra.mxu0 %vm1549_vm1, %v1135_v8  ;;  %p1263_p0 = pneg %p1262_p13  ;;  %p1268_p2 = scmp.lt.s32.totalorder %s1266_s18, %s1260_s2 }
  0x29   : > { %1138 = vmatprep.subr.bf16.mxu0 %v1432_v2  ;;  %1170 = vmatpush3.bf16.msra.mxu1 %v1139_v13 }
  0x2a   : > { %1171 = vmatprep.subr.bf16.mxu1 %v1432_v2  ;;  %p1269_p3 = por %p1268_p2, %p1267_p1 }
  0x2c   : > { %363 = vxpose.xlu0.b32.cont [3/4] (short) (narrow) %v359_v16, 8  ;;  %p1270_p5 = pnand %p1269_p3, %p1263_p0 }
  0x2d   : > { %1173 = vmatpush3.bf16.msra.mxu1 %v1143_v17 }
  0x2e   : > { %1174 = vmatprep.subr.bf16.mxu1 %v1432_v2 }
  0x30   : > { %364 = vxpose.xlu0.b32.end [4/4] (short) (narrow) %v360_v20, 8  ;;  %1141 = vmatpush3.bf16.xpose.msk.msra.mxu0 %vm1549_vm1, %v1139_v13 }
  0x31   : > { %1142 = vmatprep.subr.bf16.mxu0 %v1432_v2  ;;  %1176 = vmatpush3.bf16.msra.mxu1 %v1147_v21 }
  0x32   : > { %1177 = vmatprep.subr.bf16.mxu1 %v1432_v2 }
  0x35   : > { %1179 = vmatpush3.bf16.msra.mxu1 %v1151_v24 }
  0x36   : > { %1180 = vmatprep.subr.bf16.mxu1 %v1432_v2 }
  0x38   : > { %1145 = vmatpush3.bf16.xpose.msk.msra.mxu0 %vm1549_vm1, %v1143_v17 }
  0x39   : > { %1146 = vmatprep.subr.bf16.mxu0 %v1432_v2  ;;  %1182 = vmatpush3.bf16.msra.mxu1 %v1155_v27 }
  0x3a   : > { %1183 = vmatprep.subr.bf16.mxu1 %v1432_v2 }
  0x3d   : > { %1185 = vmatpush3.bf16.msra.mxu1 %v1159_v30 }
  0x40   : > { %1149 = vmatpush3.bf16.xpose.msk.msra.mxu0 %vm1549_vm1, %v1147_v21 }
  0x41   : > { %1150 = vmatprep.subr.bf16.mxu0 %v1432_v2 }
  0x48   : > { %1153 = vmatpush3.bf16.xpose.msk.msra.mxu0 %vm1549_vm1, %v1151_v24 }
  0x49   : > { %1154 = vmatprep.subr.bf16.mxu0 %v1432_v2 }
  0x50   : > { %1157 = vmatpush3.bf16.xpose.msk.msra.mxu0 %vm1549_vm1, %v1155_v27 }
  0x51   : > { %1158 = vmatprep.subr.bf16.mxu0 %v1432_v2 }
  0x58   : > { %1161 = vmatpush3.bf16.xpose.msk.msra.mxu0 %vm1549_vm1, %v1159_v30 }
  0xa4   : > { %v377_v31 = vpop.trf.xlu0 }
  0xa5   : > { %1093 = vmatmul.mubr.msk.f32.vlgmr.msra.gmra.mrb[0].mxu0 %vm410_vm0, %v377_v31  ;;  %v532_v32 = vmul.f32 %v377_v31, %v377_v31 }
  0xa7   : > { %v533_v33 = vsel %vm410_vm0, %v532_v32, 0.0 }
  0xa8   : > { %534 = vadd.xlane.f32.xlu1 %v533_v33 }
 0x135   : > { %v535_v35 = vpop.xlane.xlu1 %534 }
 0x136   : > { %v542_v37 = vadd.f32 %v1013_v34, %v535_v35 }
 0x178   : > { %v528_v36 = vpop.f32.mrb[0].mxu0 }
 0x179   : > { %v543_v38 = vmul.f32 2.0, %v528_v36  ;;  %v1094_v39 = vpop.f32.mrb[1].mxu0 }
 0x17b   : > { %v544_v40 = vsub.f32 %v542_v37, %v543_v38 }
 0x17d   : > { %548 = vmin.xlane.f32.xlu1 %v544_v40  ;;  %545 = vst [vmem:[%s1646_s20] sm:$0xff] %v544_v40 }
 0x20a   : > { %v549_v43 = vpop.xlane.xlu1 %548 }
 0x20b   : > { %vm550_vm3 = vcmp.eq.f32.partialorder %v544_v40, %v549_v43 }
 0x20c   : > { %v551_v44 = vsel %vm550_vm3, %v547_v42, 128 }
 0x20d   : > { %v553_v45 = vshra.s32 %v551_v44, 16  ;;  %v552_v47 = vand.u32 65535, %v551_v44 }
 0x20f   : > { %v555_v46 = vcvt.s32.f32 %v553_v45  ;;  %v554_v49 = vcvt.s32.f32 %v552_v47 }
 0x211   : > { %556 = vmin.xlane.f32.xlu1 %v555_v46 }
 0x29e   : > { %v557_v48 = vpop.xlane.xlu1 %556 }
 0x29f   : > { %vm558_vm4 = vcmp.eq.f32.partialorder %v555_v46, %v557_v48  ;;  %v563_v51 = vcvt.f32.s32 %v557_v48 }
 0x2a0   : > { %v559_v50 = vsel %vm558_vm4, %v554_v49, inf }
 0x2a1   : > { %560 = vmin.xlane.f32.xlu1 %v559_v50  ;;  %v564_v53 = vshll.u32 %v563_v51, 16 }
 0x32e   : > { %v561_v52 = vpop.xlane.xlu1 %560 }
 0x32f   : > { %v562_v54 = vcvt.f32.s32 %v561_v52 }
 0x331   : > { %v565_v55 = vadd.s32 %v564_v53, %v562_v54 }
 0x333   : > { %vm566_vm5 = vcmp.eq.s32.totalorder %v547_v42, %v565_v55 }
 0x334   : > { %v1014_v56 = vsel %vm566_vm5, 1.0, %v1434_v7  ;;  %1128 = vmatmul.mubr.msk.f32.vlgmr.msra.gmra.mrb[0].mxu1 %vm566_vm5, %v1435_v57 }
 0x335   : > { %v688_v58 = vrot.slane %v1014_v56, 4  ;;  %v569_v59 = vpack.c.bf16 %v1014_v56, %v1014_v56 }
 0x337   : > { %v689_v60 = vadd.f32 %v1014_v56, %v688_v58  ;;  %570 = vst [vmem:[%s311_s23] sm:$0xf] %v569_v59 }
 0x339   : > { %v690_v61 = vrot.slane %v689_v60, 2 }
 0x33b   : > { %v691_v62 = vadd.f32 %v690_v61, %v689_v60 }
 0x33d   : > { %v692_v63 = vrot.slane %v691_v62, 1 }
 0x33f   : > { %v693_v1 = vadd.f32 %v692_v63, %v691_v62 }
 0x341   : > { %v694_v2 = vadd.f32 %v693_v1, %v684_v0 }
 0x343   : > { %695 = vst [vmem:[%s1650_s21] sm:$0x1] %v694_v2 }
 0x407   : > { %v637_v3 = vpop.f32.mrb[0].mxu1 }
 0x408   : > { %v697_v4 = vsub.f32 %v637_v3, %v377_v31  ;;  %641 = vxpose.xlu0.b32.start.end [1/1] (short) (narrow) %v637_v3, 32  ;;  %v1129_v5 = vpop.f32.mrb[1].mxu1 }
 0x40a   : > { %v698_v6 = vmul.f32 %v697_v4, %v697_v4 }
 0x40c   : > { %v700_v8 = vsel %vm410_vm0, %v698_v6, 0.0 }
 0x40d   : > { %v701_v9 = vrot.slane %v700_v8, 4 }
 0x40f   : > { %v702_v10 = vadd.f32 %v701_v9, %v700_v8 }
 0x411   : > { %v703_v11 = vrot.slane %v702_v10, 2 }
 0x413   : > { %v704_v12 = vadd.f32 %v703_v11, %v702_v10 }
 0x415   : > { %v705_v7 = vrot.slane %v704_v12, 1 }
 0x416   : > { %1273 = shalt.err (!%p1270_p5)
}
 0x417   : > { %s1274_s23 = scalar_lea.hbm %s1673_s8, 64  ;;  %s1278_s30 = scalar_lea.hbm %s1824_s4, 128 }
 0x418   : > { %p1275_p6 = scmp.ne.s32.totalorder %s1673_s8, %s1274_s23  ;;  %p1279_p10 = scmp.lt.u32.totalorder %s1673_s8, %s1824_s4 }
 0x419   : > { %p1280_p11 = scmp.lt.u32.totalorder %s1278_s30, %s1274_s23  ;;  %p1282_p13 = scmp.lt.u32.totalorder %s1274_s23, %s1673_s8 }
 0x41a   : > { %p1276_p7 = pnand %p1275_p6, %p1522_p4 }
 0x41b   : > { %p1281_p12 = por %p1280_p11, %p1279_p10 }
 0x41c   : > { %p1277_p9 = pneg %p1276_p7 }
 0x41d   : > { %p1283_p0 = por %p1282_p13, %p1281_p12 }
 0x41f   : > { %p1284_p1 = pnand %p1283_p0, %p1277_p9 }
 0x421   : > { %1287 = shalt.err (!%p1284_p1)
}
 0x422   : > { %1187 = dma.vmem_to_hbm [thread:$0]  (%p1522_p4), %s1675_s10, 64, %s1673_s8, %s1831_s1   ;;  %v696_v13 = vld [vmem:[%s1659_s12] sm:$0x1]  ;;  %v706_v14 = vadd.f32 %v705_v7, %v704_v12 }
 0x423   : > { %s1843_s0 = sshll.u32 %s1422_s27, 7  ;;  %s746_s17 = sshll.u32 %s1646_s20, 4  ;;  %s1711_s17 = int_to_ptr.vmem [resolvable:$true] %s746_s17 }
 0x424   : > { %s1708_s23 = scalar_lea.hbm %s1823_s3, %s1843_s0  ;;  %s1020_s22 = sshll.u32 %s1422_s27, 4 }
 0x425   : > { %s711_s30 = scalar_lea.sflag [#allocation3], %s1640_s15  ;;  %s1288_s9 = scalar_lea.vmem %s1711_s17, 128 }
 0x426   : > { %p1289_p2 = scmp.ne.s32.totalorder %s1711_s17, %s1288_s9  ;;  %s1437_s8 = smov [#allocation2]  }
 0x427   : > { %s1292_s10 = sshll.u32 %s1437_s8, 4  ;;  %s1293_s10 = int_to_ptr.vmem [resolvable:$false] %s1292_s10 }
 0x428   : > { %p1290_p3 = pnand %p1289_p2, %p1522_p4  ;;  %s1294_s1 = scalar_lea.vmem %s1293_s10, 256 }
 0x429   : > { %p1295_p6 = scmp.lt.s32.totalorder %s1711_s17, %s1293_s10  ;;  %p1296_p7 = scmp.lt.s32.totalorder %s1294_s1, %s1288_s9 }
 0x42a   : > { %p1291_p5 = pneg %p1290_p3 }
 0x42b   : > { %p1297_p9 = por %p1296_p7, %p1295_p6 }
 0x42d   : > { %p1298_p10 = pnand %p1297_p9, %p1291_p5 }
 0x42f   : > { %1301 = shalt.err (!%p1298_p10)
}
 0x430   : > { %s1302_s20 = scalar_lea.hbm %s1708_s23, 128  ;;  %s1306_s18 = scalar_lea.hbm %s1823_s3, 256 }
 0x431   : > { %p1303_p11 = scmp.ne.s32.totalorder %s1708_s23, %s1302_s20  ;;  %p1307_p0 = scmp.lt.u32.totalorder %s1708_s23, %s1823_s3 }
 0x432   : > { %p1308_p1 = scmp.lt.u32.totalorder %s1306_s18, %s1302_s20  ;;  %p1310_p3 = scmp.lt.u32.totalorder %s1302_s20, %s1708_s23 }
 0x433   : > { %p1304_p12 = pnand %p1303_p11, %p1522_p4 }
 0x434   : > { %p1309_p2 = por %p1308_p1, %p1307_p0 }
 0x435   : > { %p1305_p13 = pneg %p1304_p12 }
 0x436   : > { %p1311_p5 = por %p1310_p3, %p1309_p2 }
 0x438   : > { %p1312_p6 = pnand %p1311_p5, %p1305_p13 }
 0x43a   : > { %1315 = shalt.err (!%p1312_p6)
}
 0x43b   : > { %1186 = dma.vmem_to_hbm [thread:$0]  (%p1522_p4), %s1711_s17, 128, %s1708_s23, %s711_s30   ;;  %v707_v15 = vadd.f32 %v706_v14, %v696_v13 }
 0x43c   : > { %s1741_s0 = scalar_lea.hbm %s1826_s6, %s1020_s22  ;;  %s776_s20 = sshll.u32 %s1650_s21, 4  ;;  %s777_s20 = int_to_ptr.vmem [resolvable:$true] %s776_s20 }
 0x43d   : > { %709 = vst.msk [vmem:[%s1659_s12] sm:$0x1] %vm355_vm6, %v707_v15  ;;  %s1316_s2 = scalar_lea.vmem %s777_s20, 16  ;;  %s1438_s18 = smov [#allocation6]  }
 0x43e   : > { %p1317_p7 = scmp.ne.s32.totalorder %s777_s20, %s1316_s2  ;;  %s1320_s8 = sshll.u32 %s1438_s18, 4  ;;  %s1321_s8 = int_to_ptr.vmem [resolvable:$false] %s1320_s8 }
 0x43f   : > { %s1322_s23 = scalar_lea.vmem %s1321_s8, 32  ;;  %p1323_p11 = scmp.lt.s32.totalorder %s777_s20, %s1321_s8 }
 0x440   : > { %p1318_p9 = pnand %p1317_p7, %p1522_p4  ;;  %p1324_p12 = scmp.lt.s32.totalorder %s1322_s23, %s1316_s2 }
 0x442   : > { %p1319_p10 = pneg %p1318_p9  ;;  %p1325_p13 = por %p1324_p12, %p1323_p11 }
 0x444   : > { %p1326_p0 = pnand %p1325_p13, %p1319_p10 }
 0x446   : > { %1329 = shalt.err (!%p1326_p0)
}
 0x447   : > { %s1330_s21 = scalar_lea.hbm %s1741_s0, 16  ;;  %s1334_s10 = scalar_lea.hbm %s1826_s6, 32 }
 0x448   : > { %p1331_p1 = scmp.ne.s32.totalorder %s1741_s0, %s1330_s21  ;;  %p1335_p5 = scmp.lt.u32.totalorder %s1741_s0, %s1826_s6 }
 0x449   : > { %p1336_p6 = scmp.lt.u32.totalorder %s1334_s10, %s1330_s21  ;;  %p1338_p9 = scmp.lt.u32.totalorder %s1330_s21, %s1741_s0 }
 0x44a   : > { %p1332_p2 = pnand %p1331_p1, %p1522_p4 }
 0x44b   : > { %p1337_p7 = por %p1336_p6, %p1335_p5 }
 0x44c   : > { %p1333_p3 = pneg %p1332_p2 }
 0x44d   : > { %p1339_p10 = por %p1338_p9, %p1337_p7 }
 0x44f   : > { %p1340_p11 = pnand %p1339_p10, %p1333_p3 }
 0x451   : > { %1343 = shalt.err (!%p1340_p11)
}
 0x452   : > { %s1844_s2 = scalar_lea.sflag [#allocation5], %s1667_s16  ;;  %s1770_s23 = scalar_lea.hbm %s1827_s7, %s1020_s22 }
 0x453   : > { %1188 = dma.vmem_to_hbm [thread:$0]  (%p1522_p4), %s777_s20, 16, %s1741_s0, %s1844_s2  }
 0x454   : > { %s789_s21 = sshll.u32 %s1659_s12, 4  ;;  %s733_s17 = scalar_lea.sflag [#allocation8], %s1640_s15  ;;  %s790_s21 = int_to_ptr.vmem [resolvable:$true] %s789_s21 }
 0x455   : > { %s1344_s30 = scalar_lea.vmem %s790_s21, 16  ;;  %s1439_s16 = smov [#allocation7]  }
 0x456   : > { %p1345_p12 = scmp.ne.s32.totalorder %s790_s21, %s1344_s30  ;;  %s1348_s10 = sshll.u32 %s1439_s16, 4  ;;  %s1349_s10 = int_to_ptr.vmem [resolvable:$false] %s1348_s10 }
 0x457   : > { %s1350_s1 = scalar_lea.vmem %s1349_s10, 32  ;;  %p1351_p1 = scmp.lt.s32.totalorder %s790_s21, %s1349_s10 }
 0x458   : > { %p1346_p13 = pnand %p1345_p12, %p1522_p4  ;;  %p1352_p2 = scmp.lt.s32.totalorder %s1350_s1, %s1344_s30 }
 0x45a   : > { %p1347_p0 = pneg %p1346_p13  ;;  %p1353_p3 = por %p1352_p2, %p1351_p1 }
 0x45c   : > { %p1354_p5 = pnand %p1353_p3, %p1347_p0 }
 0x45e   : > { %1357 = shalt.err (!%p1354_p5)
}
 0x45f   : > { %s1358_s27 = scalar_lea.hbm %s1770_s23, 16  ;;  %s1362_s22 = scalar_lea.hbm %s1827_s7, 32 }
 0x460   : > { %p1359_p6 = scmp.ne.s32.totalorder %s1770_s23, %s1358_s27  ;;  %p1363_p10 = scmp.lt.u32.totalorder %s1770_s23, %s1827_s7 }
 0x461   : > { %p1364_p11 = scmp.lt.u32.totalorder %s1362_s22, %s1358_s27  ;;  %p1366_p13 = scmp.lt.u32.totalorder %s1358_s27, %s1770_s23 }
 0x462   : > { %p1360_p7 = pnand %p1359_p6, %p1522_p4 }
 0x463   : > { %p1365_p12 = por %p1364_p11, %p1363_p10 }
 0x464   : > { %p1361_p9 = pneg %p1360_p7 }
 0x465   : > { %p1367_p0 = por %p1366_p13, %p1365_p12 }
 0x467   : > { %p1368_p1 = pnand %p1367_p0, %p1361_p9 }
 0x469   : > { %1371 = shalt.err (!%p1368_p1)
}
 0x46a   : > { %1189 = dma.vmem_to_hbm [thread:$0]  (%p1522_p4), %s790_s21, 16, %s1770_s23, %s733_s17   ;;  %vm673_vm7 = vcmask 64512  }
 0x46b   : > { %s1845_s9 = sshll.u32 %s1555_s19, 5 }
 0x46c   : > { %s349_s8 = scalar_lea.vmem %s1825_s5, %s1845_s9 }
 0x488   : > { %v657_v16 = vpop.trf.xlu0 }
 0x489   : > { %674 = vst.msk [vmem:[%s349_s8] sm:$0xff] %vm673_vm7, %v657_v16 }
 0x48c   : > { %v658_v17 = vpop.trf.xlu0 }
 0x48d   : > { %675 = vst.msk [vmem:[%s349_s8 + $0x8] sm:$0xff] %vm673_vm7, %v658_v17 }
 0x490   : > { %v659_v18 = vpop.trf.xlu0 }
 0x491   : > { %676 = vst.msk [vmem:[%s349_s8 + $0x10] sm:$0xff] %vm673_vm7, %v659_v18 }
 0x494   : > { %v660_v19 = vpop.trf.xlu0 }
 0x495   : > { %677 = vst.msk [vmem:[%s349_s8 + $0x18] sm:$0xff] %vm673_vm7, %v660_v19 }
 0x496 PF: > { %p1207_p2 = scmp.ge.s32.totalorder %s1430_s29, 2  ;;  %s801_s11 = sand.u32 1, %s1410_s24  }
 0x497   : > { %s802_s19 = scalar_lea.sflag [#allocation3], %s801_s11 }
 0x498   : > { %p1195_p4 = pnand %p1207_p2, %p1531_p8 }
 0x49a   : > { %1397 = dma.done.wait (!%p1195_p4), %s802_s19, 128  }
 0x49b   : > { %1399 = vsyncadd (!%p1195_p4), %s802_s19, 4294967168  ;;  %s1846_s23 = sadd.s32 4294967294, %s1430_s29  }
 0x49c   : > { %s810_s21 = sand.u32 1, %s1846_s23  }
 0x49d   : > { %s811_s17 = scalar_lea.sflag [#allocation5], %s810_s21 }
 0x49e   : > { %1401 = dma.done.wait (!%p1195_p4), %s811_s17, 80  }
 0x49f   : > { %1403 = vsyncadd (!%p1195_p4), %s811_s17, 4294967216  ;;  %s839_s30 = scalar_lea.sflag [#allocation8], %s801_s11 }
 0x4a0   : > { %1405 = dma.done.wait (!%p1195_p4), %s839_s30, 16  }
 0x4a1   : > { %1407 = vsyncadd (!%p1195_p4), %s839_s30, 4294967280  ;;  %s27_s29 = sadd.s32 1, %s1430_s29   ;;  %s1847_s13 = sld [smem:[#allocation12_spill]] }
 0x4a2   : > { %p24_p3 = scmp.ge.s32.totalorder %s27_s29, 4   ;;  %s1848_s24 = smov %s1414_s25 }
 0x4a3   : > { %s1849_s25 = smov %s1418_s26  ;;  %s1850_s26 = smov %s1537_s14 }
 0x4a4   : > { %s1851_s27 = smov %s1426_s28  ;;  %26 = sbr.rel (!%p24_p3) target bundleno = 12 (0xc), region = 132 }
 0x4a7   : > { %s1852_s28 = smov %s1847_s13 }
 0x4ab   :  { %843 = vsyncpa [#allocation3], 1 }
 0x4ac   :  { %845 = vsyncpa [#allocation3 + $0x1], 1 }
 0x4ad   :  { %846 = vsyncpa [#allocation5], 1 }
 0x4ae   :  { %848 = vsyncpa [#allocation5 + $0x1], 1 }
 0x4af   :  { %849 = vsyncpa [#allocation8], 1 }
 0x4b0   :  { %851 = vsyncpa [#allocation8 + $0x1], 1 }

</bundles_post_ra>
